<compile_context>
chip_gen: v6e
topology: v6e:2x2x1
jax: 0.10.0
libtpu: 0.0.40
codegen_flags: <defaults>
</compile_context>

<pallas_src>
import functools

import jax
import jax.numpy as jnp
from jax import lax
from jax.experimental import pallas as pl
from jax.experimental.pallas import tpu as pltpu


# ------------------------------ fused kernel -------------------------------
def _seq2seq_kernel(enc_xg_ref,     # (S, B, 4H)  src @ Wx_enc + b_enc   [i,f,o,g]
                    enc_wh_ref,     # (H, 4H)
                    dec_xg0_ref,    # (B, 4H)     trg[:,0] @ Wcomb + b_dec
                    dec_wcomb_ref,  # (V, 4H)     Wemb @ Wx_dec
                    dec_wh_ref,     # (H, 4H)
                    dec_b_ref,      # (1, 4H)
                    dec_wout_ref,   # (H, V)
                    dec_bout_ref,   # (1, V)
                    out_ref):       # (T-1, B, V)
    S, B, H4 = enc_xg_ref.shape
    H = enc_wh_ref.shape[0]
    V = dec_wout_ref.shape[1]
    n_steps = out_ref.shape[0]

    def lstm_gates(pre, c):
        # gate layout along last axis is [i, f, o | g]: one wide sigmoid + tanh
        s = jax.nn.sigmoid(pre[:, :3 * H])
        i_g = s[:, 0 * H:1 * H]
        f_g = s[:, 1 * H:2 * H]
        o_g = s[:, 2 * H:3 * H]
        g_g = jnp.tanh(pre[:, 3 * H:4 * H])
        c_new = f_g * c + i_g * g_g
        h_new = o_g * jnp.tanh(c_new)
        return h_new, c_new

    # ------------- encoder: x-projection hoisted, only h@Wh in loop ----------
    enc_wh = enc_wh_ref[...]

    def enc_step(t, carry):
        h, c = carry
        pre = enc_xg_ref[t] + jnp.dot(h, enc_wh,
                                      preferred_element_type=jnp.float32)
        return lstm_gates(pre, c)

    h0 = jnp.zeros((B, H), jnp.float32)
    c0 = jnp.zeros((B, H), jnp.float32)
    h, c = lax.fori_loop(0, S, enc_step, (h0, c0), unroll=True)

    # ------------- decoder: greedy rollout -----------------------------------
    dec_wcomb = dec_wcomb_ref[...]
    dec_wh = dec_wh_ref[...]
    dec_b = dec_b_ref[...]
    dec_wout = dec_wout_ref[...]
    dec_bout = dec_bout_ref[...]

    def dec_step(t, carry):
        h, c, xg = carry                                     # xg: (B, 4H)
        pre = xg + jnp.dot(h, dec_wh, preferred_element_type=jnp.float32)
        h, c = lstm_gates(pre, c)
        logits = (jnp.dot(h, dec_wout, preferred_element_type=jnp.float32)
                  + dec_bout)                                # (B, V)
        out_ref[pl.ds(t, 1)] = logits[None]

        # PyTorch `top1[:, output.argmax(1)] = 1.0`:
        # union of per-row argmax columns (same feedback for every row).
        col = lax.broadcasted_iota(jnp.int32, (B, V), 1)
        row_max = jnp.max(logits, axis=1, keepdims=True)
        amax = jnp.min(jnp.where(logits == row_max, col, V), axis=1,
                       keepdims=True)                        # first max per row
        per_row = (col == amax).astype(jnp.float32)          # (B, V)
        union = jnp.max(per_row, axis=0, keepdims=True)      # (1, V)

        # feedback gate pre-activation computed ONCE from the (1, V) union row
        xg_row = (jnp.dot(union, dec_wcomb,
                          preferred_element_type=jnp.float32) + dec_b)  # (1,4H)
        xg_next = jnp.broadcast_to(xg_row, (B, H4))
        return h, c, xg_next

    _ = lax.fori_loop(0, n_steps, dec_step, (h, c, dec_xg0_ref[...]),
                      unroll=True)


# ------------------------------- wrapper ------------------------------------
def _reorder_ifgo_to_ifog(w):
    """Permute the 4H gate axis (last) from [i, f, g, o] to [i, f, o, g]."""
    i, f, g, o = jnp.split(w, 4, axis=-1)
    return jnp.concatenate([i, f, o, g], axis=-1)


@functools.partial(jax.jit, static_argnames=("max_length",))
def seq2seq_forward(src, trg, params, max_length=10):
    """src: (B, src_len, in_dim); trg: (B, max_length, vocab) one-hot-ish."""
    B, S, _ = src.shape
    H = params["enc_wh"].shape[0]
    V = params["dec_wout"].shape[1]
    n_steps = max_length - 1

    # ---- parameter prep / glue (plain XLA, off the serial recurrence path) --
    enc_wx = _reorder_ifgo_to_ifog(params["enc_wx"])
    enc_wh = _reorder_ifgo_to_ifog(params["enc_wh"])
    enc_b = _reorder_ifgo_to_ifog(params["enc_b"])
    dec_wx = _reorder_ifgo_to_ifog(params["dec_wx"])
    dec_wh = _reorder_ifgo_to_ifog(params["dec_wh"])
    dec_b = _reorder_ifgo_to_ifog(params["dec_b"])

    src_tbd = jnp.transpose(src, (1, 0, 2)).astype(jnp.float32)      # (S, B, In)
    # hoist encoder input projection out of the recurrence (one big matmul)
    enc_xg = jnp.einsum("sbi,ih->sbh", src_tbd, enc_wx) + enc_b      # (S, B, 4H)
    # fold the decoder embedding into the gate weights (exact identity)
    dec_wcomb = params["dec_wemb"].astype(jnp.float32) @ dec_wx      # (V, 4H)
    dec_xg0 = trg[:, 0, :].astype(jnp.float32) @ dec_wcomb + dec_b   # (B, 4H)

    dec_out = pl.pallas_call(
        _seq2seq_kernel,
        out_shape=jax.ShapeDtypeStruct((n_steps, B, V), jnp.float32),
        grid_spec=pltpu.PrefetchScalarGridSpec(
            num_scalar_prefetch=0,
            grid=(1,),
            in_specs=[
                pl.BlockSpec((S, B, 4 * H), lambda i: (0, 0, 0)),   # enc_xg
                pl.BlockSpec((H, 4 * H), lambda i: (0, 0)),         # enc_wh
                pl.BlockSpec((B, 4 * H), lambda i: (0, 0)),         # dec_xg0
                pl.BlockSpec((V, 4 * H), lambda i: (0, 0)),         # dec_wcomb
                pl.BlockSpec((H, 4 * H), lambda i: (0, 0)),         # dec_wh
                pl.BlockSpec((1, 4 * H), lambda i: (0, 0)),         # dec_b
                pl.BlockSpec((H, V), lambda i: (0, 0)),             # dec_wout
                pl.BlockSpec((1, V), lambda i: (0, 0)),             # dec_bout
            ],
            out_specs=pl.BlockSpec((n_steps, B, V), lambda i: (0, 0, 0)),
        ),
        compiler_params=pltpu.CompilerParams(
            # single sequential grid step carrying the whole recurrence;
            # must stay "arbitrary" (never "parallel").
            dimension_semantics=("arbitrary",)),
    )(enc_xg, enc_wh, dec_xg0, dec_wcomb, dec_wh, dec_b,
      params["dec_wout"], params["dec_bout"])

    outputs = jnp.concatenate(
        [jnp.zeros((1, B, V), jnp.float32), dec_out], axis=0)        # (T, B, V)
    return jnp.transpose(outputs, (1, 0, 2))                          # (B, T, V)


# --------------------------- pure-JAX reference -----------------------------
def _lstm_step(x, h, c, wx, wh, b):
    H = h.shape[1]
    gates = x @ wx + h @ wh + b
    i = jax.nn.sigmoid(gates[:, 0 * H:1 * H])
    f = jax.nn.sigmoid(gates[:, 1 * H:2 * H])
    g = jnp.tanh(gates[:, 2 * H:3 * H])
    o = jax.nn.sigmoid(gates[:, 3 * H:4 * H])
    c = f * c + i * g
    h = o * jnp.tanh(c)
    return h, c


def seq2seq_reference(src, trg, p, max_length=10):
    B, S, _ = src.shape
    H = p["enc_wh"].shape[0]
    V = p["dec_wout"].shape[1]
    h = jnp.zeros((B, H), jnp.float32)
    c = jnp.zeros((B, H), jnp.float32)
    for t in range(S):
        h, c = _lstm_step(src[:, t, :], h, c, p["enc_wx"], p["enc_wh"], p["enc_b"])
    outputs = [jnp.zeros((B, V), jnp.float32)]
    x = trg[:, 0, :]
    for t in range(1, max_length):
        emb = x @ p["dec_wemb"]
        h, c = _lstm_step(emb, h, c, p["dec_wx"], p["dec_wh"], p["dec_b"])
        logits = h @ p["dec_wout"] + p["dec_bout"]
        outputs.append(logits)
        topidx = jnp.argmax(logits, axis=1)                      # (B,)
        union = jnp.max(jax.nn.one_hot(topidx, V), axis=0)       # union over batch
        x = jnp.broadcast_to(union[None, :], (B, V)).astype(jnp.float32)
    return jnp.transpose(jnp.stack(outputs, axis=0), (1, 0, 2))


# ----------------------------------- main -----------------------------------
if __name__ == "__main__":
    B, SRC_LEN, IN_DIM, HID, EMB, VOCAB, MAX_LEN = 8, 8, 16, 32, 16, 32, 10

    key = jax.random.PRNGKey(0)
    ks = jax.random.split(key, 12)
    f32 = jnp.float32
    params = {
        "enc_wx":  0.1 * jax.random.normal(ks[0], (IN_DIM, 4 * HID), f32),
        "enc_wh":  0.1 * jax.random.normal(ks[1], (HID, 4 * HID), f32),
        "enc_b":   0.1 * jax.random.normal(ks[2], (1, 4 * HID), f32),
        "dec_wemb": 0.1 * jax.random.normal(ks[3], (VOCAB, EMB), f32),
        "dec_wx":  0.1 * jax.random.normal(ks[4], (EMB, 4 * HID), f32),
        "dec_wh":  0.1 * jax.random.normal(ks[5], (HID, 4 * HID), f32),
        "dec_b":   0.1 * jax.random.normal(ks[6], (1, 4 * HID), f32),
        "dec_wout": 0.1 * jax.random.normal(ks[7], (HID, VOCAB), f32),
        "dec_bout": 0.1 * jax.random.normal(ks[8], (1, VOCAB), f32),
    }

    src = jax.random.normal(ks[9], (B, SRC_LEN, IN_DIM), f32)
    trg_tokens = jax.random.randint(ks[10], (B, MAX_LEN), 0, VOCAB)
    trg = jax.nn.one_hot(trg_tokens, VOCAB, dtype=f32)           # (B, MAX_LEN, VOCAB)

    out = seq2seq_forward(src, trg, params, max_length=MAX_LEN)
    out = jax.block_until_ready(out)

    ref = seq2seq_reference(src, trg, params, max_length=MAX_LEN)
    assert out.shape == (B, MAX_LEN, VOCAB), out.shape
    assert jnp.allclose(out, ref, atol=1e-4, rtol=1e-4), \
        float(jnp.max(jnp.abs(out - ref)))

    print("KERNEL_OK")
</pallas_src>

<mosaic_0001>
module attributes {stable_mosaic.version = 11 : i64} {
  func.func @_seq2seq_kernel(%arg0: i32, %arg1: memref<8x8x128xf32, #tpu.memory_space<vmem>>, %arg2: memref<32x128xf32, #tpu.memory_space<vmem>>, %arg3: memref<8x128xf32, #tpu.memory_space<vmem>>, %arg4: memref<32x128xf32, #tpu.memory_space<vmem>>, %arg5: memref<32x128xf32, #tpu.memory_space<vmem>>, %arg6: memref<1x128xf32, #tpu.memory_space<vmem>>, %arg7: memref<32x32xf32, #tpu.memory_space<vmem>>, %arg8: memref<1x32xf32, #tpu.memory_space<vmem>>, %arg9: memref<9x8x32xf32, #tpu.memory_space<vmem>>) attributes {dimension_semantics = [#tpu.dimension_semantics<arbitrary>], iteration_bounds = array<i64: 1>, scalar_prefetch = 0 : i64, scratch_operands = 0 : i64, tpu.core_type = #tpu.core_type<tc>, window_params = [{pipeline_mode = #tpu.pipeline_mode<synchronous>, transform_indices = @transform_0, window_bounds = array<i64: 8, 8, 128>}, {pipeline_mode = #tpu.pipeline_mode<synchronous>, transform_indices = @transform_1, window_bounds = array<i64: 32, 128>}, {pipeline_mode = #tpu.pipeline_mode<synchronous>, transform_indices = @transform_2, window_bounds = array<i64: 8, 128>}, {pipeline_mode = #tpu.pipeline_mode<synchronous>, transform_indices = @transform_3, window_bounds = array<i64: 32, 128>}, {pipeline_mode = #tpu.pipeline_mode<synchronous>, transform_indices = @transform_4, window_bounds = array<i64: 32, 128>}, {pipeline_mode = #tpu.pipeline_mode<synchronous>, transform_indices = @transform_5, window_bounds = array<i64: 1, 128>}, {pipeline_mode = #tpu.pipeline_mode<synchronous>, transform_indices = @transform_6, window_bounds = array<i64: 32, 32>}, {pipeline_mode = #tpu.pipeline_mode<synchronous>, transform_indices = @transform_7, window_bounds = array<i64: 1, 32>}, {pipeline_mode = #tpu.pipeline_mode<synchronous>, transform_indices = @transform_8, window_bounds = array<i64: 9, 8, 32>}]} {
    %c0 = arith.constant 0 : index
    %c0_0 = arith.constant 0 : index
    %0 = vector.load %arg2[%c0, %c0_0] : memref<32x128xf32, #tpu.memory_space<vmem>>, vector<32x128xf32>
    %cst = arith.constant 0.000000e+00 : f32
    %1 = vector.broadcast %cst : f32 to vector<8x32xf32>
    %cst_1 = arith.constant 0.000000e+00 : f32
    %2 = vector.broadcast %cst_1 : f32 to vector<8x32xf32>
    %c0_i32 = arith.constant 0 : i32
    %3 = arith.index_cast %c0_i32 : i32 to index
    %c0_2 = arith.constant 0 : index
    %c0_3 = arith.constant 0 : index
    %4 = vector.load %arg1[%3, %c0_2, %c0_3] : memref<8x8x128xf32, #tpu.memory_space<vmem>>, vector<1x8x128xf32>
    %5 = vector.shape_cast %4 : vector<1x8x128xf32> to vector<8x128xf32>
    %cst_4 = arith.constant dense<0.000000e+00> : vector<8x128xf32>
    %6 = tpu.matmul %1, %0, %cst_4 {dimension_numbers = #tpu.dot_dimension_numbers<[1], [0], [0], [1], [0, 0, 1, 1], [], []>} : vector<8x32xf32>, vector<32x128xf32>, vector<8x128xf32> -> vector<8x128xf32>
    %7 = arith.addf %5, %6 : vector<8x128xf32>
    %8 = vector.extract_strided_slice %7 {offsets = [0, 0], sizes = [8, 96], strides = [1, 1]} : vector<8x128xf32> to vector<8x96xf32>
    %9 = arith.negf %8 : vector<8x96xf32>
    %10 = math.exp %9 : vector<8x96xf32>
    %cst_5 = arith.constant 1.000000e+00 : f32
    %11 = vector.broadcast %cst_5 : f32 to vector<8x96xf32>
    %12 = arith.addf %11, %10 : vector<8x96xf32>
    %13 = arith.divf %11, %12 : vector<8x96xf32>
    %14 = vector.extract_strided_slice %13 {offsets = [0, 0], sizes = [8, 32], strides = [1, 1]} : vector<8x96xf32> to vector<8x32xf32>
    %15 = vector.extract_strided_slice %13 {offsets = [0, 32], sizes = [8, 32], strides = [1, 1]} : vector<8x96xf32> to vector<8x32xf32>
    %16 = vector.extract_strided_slice %13 {offsets = [0, 64], sizes = [8, 32], strides = [1, 1]} : vector<8x96xf32> to vector<8x32xf32>
    %17 = vector.extract_strided_slice %7 {offsets = [0, 96], sizes = [8, 32], strides = [1, 1]} : vector<8x128xf32> to vector<8x32xf32>
    %18 = math.tanh %17 : vector<8x32xf32>
    %19 = arith.mulf %15, %2 : vector<8x32xf32>
    %20 = arith.mulf %14, %18 : vector<8x32xf32>
    %21 = arith.addf %19, %20 : vector<8x32xf32>
    %22 = math.tanh %21 : vector<8x32xf32>
    %23 = arith.mulf %16, %22 : vector<8x32xf32>
    %c1_i32 = arith.constant 1 : i32
    %24 = arith.index_cast %c1_i32 : i32 to index
    %c0_6 = arith.constant 0 : index
    %c0_7 = arith.constant 0 : index
    %25 = vector.load %arg1[%24, %c0_6, %c0_7] : memref<8x8x128xf32, #tpu.memory_space<vmem>>, vector<1x8x128xf32>
    %26 = vector.shape_cast %25 : vector<1x8x128xf32> to vector<8x128xf32>
    %cst_8 = arith.constant dense<0.000000e+00> : vector<8x128xf32>
    %27 = tpu.matmul %23, %0, %cst_8 {dimension_numbers = #tpu.dot_dimension_numbers<[1], [0], [0], [1], [0, 0, 1, 1], [], []>} : vector<8x32xf32>, vector<32x128xf32>, vector<8x128xf32> -> vector<8x128xf32>
    %28 = arith.addf %26, %27 : vector<8x128xf32>
    %29 = vector.extract_strided_slice %28 {offsets = [0, 0], sizes = [8, 96], strides = [1, 1]} : vector<8x128xf32> to vector<8x96xf32>
    %30 = arith.negf %29 : vector<8x96xf32>
    %31 = math.exp %30 : vector<8x96xf32>
    %cst_9 = arith.constant 1.000000e+00 : f32
    %32 = vector.broadcast %cst_9 : f32 to vector<8x96xf32>
    %33 = arith.addf %32, %31 : vector<8x96xf32>
    %34 = arith.divf %32, %33 : vector<8x96xf32>
    %35 = vector.extract_strided_slice %34 {offsets = [0, 0], sizes = [8, 32], strides = [1, 1]} : vector<8x96xf32> to vector<8x32xf32>
    %36 = vector.extract_strided_slice %34 {offsets = [0, 32], sizes = [8, 32], strides = [1, 1]} : vector<8x96xf32> to vector<8x32xf32>
    %37 = vector.extract_strided_slice %34 {offsets = [0, 64], sizes = [8, 32], strides = [1, 1]} : vector<8x96xf32> to vector<8x32xf32>
    %38 = vector.extract_strided_slice %28 {offsets = [0, 96], sizes = [8, 32], strides = [1, 1]} : vector<8x128xf32> to vector<8x32xf32>
    %39 = math.tanh %38 : vector<8x32xf32>
    %40 = arith.mulf %36, %21 : vector<8x32xf32>
    %41 = arith.mulf %35, %39 : vector<8x32xf32>
    %42 = arith.addf %40, %41 : vector<8x32xf32>
    %43 = math.tanh %42 : vector<8x32xf32>
    %44 = arith.mulf %37, %43 : vector<8x32xf32>
    %c2_i32 = arith.constant 2 : i32
    %45 = arith.index_cast %c2_i32 : i32 to index
    %c0_10 = arith.constant 0 : index
    %c0_11 = arith.constant 0 : index
    %46 = vector.load %arg1[%45, %c0_10, %c0_11] : memref<8x8x128xf32, #tpu.memory_space<vmem>>, vector<1x8x128xf32>
    %47 = vector.shape_cast %46 : vector<1x8x128xf32> to vector<8x128xf32>
    %cst_12 = arith.constant dense<0.000000e+00> : vector<8x128xf32>
    %48 = tpu.matmul %44, %0, %cst_12 {dimension_numbers = #tpu.dot_dimension_numbers<[1], [0], [0], [1], [0, 0, 1, 1], [], []>} : vector<8x32xf32>, vector<32x128xf32>, vector<8x128xf32> -> vector<8x128xf32>
    %49 = arith.addf %47, %48 : vector<8x128xf32>
    %50 = vector.extract_strided_slice %49 {offsets = [0, 0], sizes = [8, 96], strides = [1, 1]} : vector<8x128xf32> to vector<8x96xf32>
    %51 = arith.negf %50 : vector<8x96xf32>
    %52 = math.exp %51 : vector<8x96xf32>
    %cst_13 = arith.constant 1.000000e+00 : f32
    %53 = vector.broadcast %cst_13 : f32 to vector<8x96xf32>
    %54 = arith.addf %53, %52 : vector<8x96xf32>
    %55 = arith.divf %53, %54 : vector<8x96xf32>
    %56 = vector.extract_strided_slice %55 {offsets = [0, 0], sizes = [8, 32], strides = [1, 1]} : vector<8x96xf32> to vector<8x32xf32>
    %57 = vector.extract_strided_slice %55 {offsets = [0, 32], sizes = [8, 32], strides = [1, 1]} : vector<8x96xf32> to vector<8x32xf32>
    %58 = vector.extract_strided_slice %55 {offsets = [0, 64], sizes = [8, 32], strides = [1, 1]} : vector<8x96xf32> to vector<8x32xf32>
    %59 = vector.extract_strided_slice %49 {offsets = [0, 96], sizes = [8, 32], strides = [1, 1]} : vector<8x128xf32> to vector<8x32xf32>
    %60 = math.tanh %59 : vector<8x32xf32>
    %61 = arith.mulf %57, %42 : vector<8x32xf32>
    %62 = arith.mulf %56, %60 : vector<8x32xf32>
    %63 = arith.addf %61, %62 : vector<8x32xf32>
    %64 = math.tanh %63 : vector<8x32xf32>
    %65 = arith.mulf %58, %64 : vector<8x32xf32>
    %c3_i32 = arith.constant 3 : i32
    %66 = arith.index_cast %c3_i32 : i32 to index
    %c0_14 = arith.constant 0 : index
    %c0_15 = arith.constant 0 : index
    %67 = vector.load %arg1[%66, %c0_14, %c0_15] : memref<8x8x128xf32, #tpu.memory_space<vmem>>, vector<1x8x128xf32>
    %68 = vector.shape_cast %67 : vector<1x8x128xf32> to vector<8x128xf32>
    %cst_16 = arith.constant dense<0.000000e+00> : vector<8x128xf32>
    %69 = tpu.matmul %65, %0, %cst_16 {dimension_numbers = #tpu.dot_dimension_numbers<[1], [0], [0], [1], [0, 0, 1, 1], [], []>} : vector<8x32xf32>, vector<32x128xf32>, vector<8x128xf32> -> vector<8x128xf32>
    %70 = arith.addf %68, %69 : vector<8x128xf32>
    %71 = vector.extract_strided_slice %70 {offsets = [0, 0], sizes = [8, 96], strides = [1, 1]} : vector<8x128xf32> to vector<8x96xf32>
    %72 = arith.negf %71 : vector<8x96xf32>
    %73 = math.exp %72 : vector<8x96xf32>
    %cst_17 = arith.constant 1.000000e+00 : f32
    %74 = vector.broadcast %cst_17 : f32 to vector<8x96xf32>
    %75 = arith.addf %74, %73 : vector<8x96xf32>
    %76 = arith.divf %74, %75 : vector<8x96xf32>
    %77 = vector.extract_strided_slice %76 {offsets = [0, 0], sizes = [8, 32], strides = [1, 1]} : vector<8x96xf32> to vector<8x32xf32>
    %78 = vector.extract_strided_slice %76 {offsets = [0, 32], sizes = [8, 32], strides = [1, 1]} : vector<8x96xf32> to vector<8x32xf32>
    %79 = vector.extract_strided_slice %76 {offsets = [0, 64], sizes = [8, 32], strides = [1, 1]} : vector<8x96xf32> to vector<8x32xf32>
    %80 = vector.extract_strided_slice %70 {offsets = [0, 96], sizes = [8, 32], strides = [1, 1]} : vector<8x128xf32> to vector<8x32xf32>
    %81 = math.tanh %80 : vector<8x32xf32>
    %82 = arith.mulf %78, %63 : vector<8x32xf32>
    %83 = arith.mulf %77, %81 : vector<8x32xf32>
    %84 = arith.addf %82, %83 : vector<8x32xf32>
    %85 = math.tanh %84 : vector<8x32xf32>
    %86 = arith.mulf %79, %85 : vector<8x32xf32>
    %c4_i32 = arith.constant 4 : i32
    %87 = arith.index_cast %c4_i32 : i32 to index
    %c0_18 = arith.constant 0 : index
    %c0_19 = arith.constant 0 : index
    %88 = vector.load %arg1[%87, %c0_18, %c0_19] : memref<8x8x128xf32, #tpu.memory_space<vmem>>, vector<1x8x128xf32>
    %89 = vector.shape_cast %88 : vector<1x8x128xf32> to vector<8x128xf32>
    %cst_20 = arith.constant dense<0.000000e+00> : vector<8x128xf32>
    %90 = tpu.matmul %86, %0, %cst_20 {dimension_numbers = #tpu.dot_dimension_numbers<[1], [0], [0], [1], [0, 0, 1, 1], [], []>} : vector<8x32xf32>, vector<32x128xf32>, vector<8x128xf32> -> vector<8x128xf32>
    %91 = arith.addf %89, %90 : vector<8x128xf32>
    %92 = vector.extract_strided_slice %91 {offsets = [0, 0], sizes = [8, 96], strides = [1, 1]} : vector<8x128xf32> to vector<8x96xf32>
    %93 = arith.negf %92 : vector<8x96xf32>
    %94 = math.exp %93 : vector<8x96xf32>
    %cst_21 = arith.constant 1.000000e+00 : f32
    %95 = vector.broadcast %cst_21 : f32 to vector<8x96xf32>
    %96 = arith.addf %95, %94 : vector<8x96xf32>
    %97 = arith.divf %95, %96 : vector<8x96xf32>
    %98 = vector.extract_strided_slice %97 {offsets = [0, 0], sizes = [8, 32], strides = [1, 1]} : vector<8x96xf32> to vector<8x32xf32>
    %99 = vector.extract_strided_slice %97 {offsets = [0, 32], sizes = [8, 32], strides = [1, 1]} : vector<8x96xf32> to vector<8x32xf32>
    %100 = vector.extract_strided_slice %97 {offsets = [0, 64], sizes = [8, 32], strides = [1, 1]} : vector<8x96xf32> to vector<8x32xf32>
    %101 = vector.extract_strided_slice %91 {offsets = [0, 96], sizes = [8, 32], strides = [1, 1]} : vector<8x128xf32> to vector<8x32xf32>
    %102 = math.tanh %101 : vector<8x32xf32>
    %103 = arith.mulf %99, %84 : vector<8x32xf32>
    %104 = arith.mulf %98, %102 : vector<8x32xf32>
    %105 = arith.addf %103, %104 : vector<8x32xf32>
    %106 = math.tanh %105 : vector<8x32xf32>
    %107 = arith.mulf %100, %106 : vector<8x32xf32>
    %c5_i32 = arith.constant 5 : i32
    %108 = arith.index_cast %c5_i32 : i32 to index
    %c0_22 = arith.constant 0 : index
    %c0_23 = arith.constant 0 : index
    %109 = vector.load %arg1[%108, %c0_22, %c0_23] : memref<8x8x128xf32, #tpu.memory_space<vmem>>, vector<1x8x128xf32>
    %110 = vector.shape_cast %109 : vector<1x8x128xf32> to vector<8x128xf32>
    %cst_24 = arith.constant dense<0.000000e+00> : vector<8x128xf32>
    %111 = tpu.matmul %107, %0, %cst_24 {dimension_numbers = #tpu.dot_dimension_numbers<[1], [0], [0], [1], [0, 0, 1, 1], [], []>} : vector<8x32xf32>, vector<32x128xf32>, vector<8x128xf32> -> vector<8x128xf32>
    %112 = arith.addf %110, %111 : vector<8x128xf32>
    %113 = vector.extract_strided_slice %112 {offsets = [0, 0], sizes = [8, 96], strides = [1, 1]} : vector<8x128xf32> to vector<8x96xf32>
    %114 = arith.negf %113 : vector<8x96xf32>
    %115 = math.exp %114 : vector<8x96xf32>
    %cst_25 = arith.constant 1.000000e+00 : f32
    %116 = vector.broadcast %cst_25 : f32 to vector<8x96xf32>
    %117 = arith.addf %116, %115 : vector<8x96xf32>
    %118 = arith.divf %116, %117 : vector<8x96xf32>
    %119 = vector.extract_strided_slice %118 {offsets = [0, 0], sizes = [8, 32], strides = [1, 1]} : vector<8x96xf32> to vector<8x32xf32>
    %120 = vector.extract_strided_slice %118 {offsets = [0, 32], sizes = [8, 32], strides = [1, 1]} : vector<8x96xf32> to vector<8x32xf32>
    %121 = vector.extract_strided_slice %118 {offsets = [0, 64], sizes = [8, 32], strides = [1, 1]} : vector<8x96xf32> to vector<8x32xf32>
    %122 = vector.extract_strided_slice %112 {offsets = [0, 96], sizes = [8, 32], strides = [1, 1]} : vector<8x128xf32> to vector<8x32xf32>
    %123 = math.tanh %122 : vector<8x32xf32>
    %124 = arith.mulf %120, %105 : vector<8x32xf32>
    %125 = arith.mulf %119, %123 : vector<8x32xf32>
    %126 = arith.addf %124, %125 : vector<8x32xf32>
    %127 = math.tanh %126 : vector<8x32xf32>
    %128 = arith.mulf %121, %127 : vector<8x32xf32>
    %c6_i32 = arith.constant 6 : i32
    %129 = arith.index_cast %c6_i32 : i32 to index
    %c0_26 = arith.constant 0 : index
    %c0_27 = arith.constant 0 : index
    %130 = vector.load %arg1[%129, %c0_26, %c0_27] : memref<8x8x128xf32, #tpu.memory_space<vmem>>, vector<1x8x128xf32>
    %131 = vector.shape_cast %130 : vector<1x8x128xf32> to vector<8x128xf32>
    %cst_28 = arith.constant dense<0.000000e+00> : vector<8x128xf32>
    %132 = tpu.matmul %128, %0, %cst_28 {dimension_numbers = #tpu.dot_dimension_numbers<[1], [0], [0], [1], [0, 0, 1, 1], [], []>} : vector<8x32xf32>, vector<32x128xf32>, vector<8x128xf32> -> vector<8x128xf32>
    %133 = arith.addf %131, %132 : vector<8x128xf32>
    %134 = vector.extract_strided_slice %133 {offsets = [0, 0], sizes = [8, 96], strides = [1, 1]} : vector<8x128xf32> to vector<8x96xf32>
    %135 = arith.negf %134 : vector<8x96xf32>
    %136 = math.exp %135 : vector<8x96xf32>
    %cst_29 = arith.constant 1.000000e+00 : f32
    %137 = vector.broadcast %cst_29 : f32 to vector<8x96xf32>
    %138 = arith.addf %137, %136 : vector<8x96xf32>
    %139 = arith.divf %137, %138 : vector<8x96xf32>
    %140 = vector.extract_strided_slice %139 {offsets = [0, 0], sizes = [8, 32], strides = [1, 1]} : vector<8x96xf32> to vector<8x32xf32>
    %141 = vector.extract_strided_slice %139 {offsets = [0, 32], sizes = [8, 32], strides = [1, 1]} : vector<8x96xf32> to vector<8x32xf32>
    %142 = vector.extract_strided_slice %139 {offsets = [0, 64], sizes = [8, 32], strides = [1, 1]} : vector<8x96xf32> to vector<8x32xf32>
    %143 = vector.extract_strided_slice %133 {offsets = [0, 96], sizes = [8, 32], strides = [1, 1]} : vector<8x128xf32> to vector<8x32xf32>
    %144 = math.tanh %143 : vector<8x32xf32>
    %145 = arith.mulf %141, %126 : vector<8x32xf32>
    %146 = arith.mulf %140, %144 : vector<8x32xf32>
    %147 = arith.addf %145, %146 : vector<8x32xf32>
    %148 = math.tanh %147 : vector<8x32xf32>
    %149 = arith.mulf %142, %148 : vector<8x32xf32>
    %c7_i32 = arith.constant 7 : i32
    %150 = arith.index_cast %c7_i32 : i32 to index
    %c0_30 = arith.constant 0 : index
    %c0_31 = arith.constant 0 : index
    %151 = vector.load %arg1[%150, %c0_30, %c0_31] : memref<8x8x128xf32, #tpu.memory_space<vmem>>, vector<1x8x128xf32>
    %152 = vector.shape_cast %151 : vector<1x8x128xf32> to vector<8x128xf32>
    %cst_32 = arith.constant dense<0.000000e+00> : vector<8x128xf32>
    %153 = tpu.matmul %149, %0, %cst_32 {dimension_numbers = #tpu.dot_dimension_numbers<[1], [0], [0], [1], [0, 0, 1, 1], [], []>} : vector<8x32xf32>, vector<32x128xf32>, vector<8x128xf32> -> vector<8x128xf32>
    %154 = arith.addf %152, %153 : vector<8x128xf32>
    %155 = vector.extract_strided_slice %154 {offsets = [0, 0], sizes = [8, 96], strides = [1, 1]} : vector<8x128xf32> to vector<8x96xf32>
    %156 = arith.negf %155 : vector<8x96xf32>
    %157 = math.exp %156 : vector<8x96xf32>
    %cst_33 = arith.constant 1.000000e+00 : f32
    %158 = vector.broadcast %cst_33 : f32 to vector<8x96xf32>
    %159 = arith.addf %158, %157 : vector<8x96xf32>
    %160 = arith.divf %158, %159 : vector<8x96xf32>
    %161 = vector.extract_strided_slice %160 {offsets = [0, 0], sizes = [8, 32], strides = [1, 1]} : vector<8x96xf32> to vector<8x32xf32>
    %162 = vector.extract_strided_slice %160 {offsets = [0, 32], sizes = [8, 32], strides = [1, 1]} : vector<8x96xf32> to vector<8x32xf32>
    %163 = vector.extract_strided_slice %160 {offsets = [0, 64], sizes = [8, 32], strides = [1, 1]} : vector<8x96xf32> to vector<8x32xf32>
    %164 = vector.extract_strided_slice %154 {offsets = [0, 96], sizes = [8, 32], strides = [1, 1]} : vector<8x128xf32> to vector<8x32xf32>
    %165 = math.tanh %164 : vector<8x32xf32>
    %166 = arith.mulf %162, %147 : vector<8x32xf32>
    %167 = arith.mulf %161, %165 : vector<8x32xf32>
    %168 = arith.addf %166, %167 : vector<8x32xf32>
    %169 = math.tanh %168 : vector<8x32xf32>
    %170 = arith.mulf %163, %169 : vector<8x32xf32>
    %c8_i32 = arith.constant 8 : i32
    %c0_34 = arith.constant 0 : index
    %c0_35 = arith.constant 0 : index
    %171 = vector.load %arg4[%c0_34, %c0_35] : memref<32x128xf32, #tpu.memory_space<vmem>>, vector<32x128xf32>
    %c0_36 = arith.constant 0 : index
    %c0_37 = arith.constant 0 : index
    %172 = vector.load %arg5[%c0_36, %c0_37] : memref<32x128xf32, #tpu.memory_space<vmem>>, vector<32x128xf32>
    %c0_38 = arith.constant 0 : index
    %c0_39 = arith.constant 0 : index
    %173 = vector.load %arg6[%c0_38, %c0_39] : memref<1x128xf32, #tpu.memory_space<vmem>>, vector<1x128xf32>
    %c0_40 = arith.constant 0 : index
    %c0_41 = arith.constant 0 : index
    %174 = vector.load %arg7[%c0_40, %c0_41] : memref<32x32xf32, #tpu.memory_space<vmem>>, vector<32x32xf32>
    %c0_42 = arith.constant 0 : index
    %c0_43 = arith.constant 0 : index
    %175 = vector.load %arg8[%c0_42, %c0_43] : memref<1x32xf32, #tpu.memory_space<vmem>>, vector<1x32xf32>
    %c0_44 = arith.constant 0 : index
    %c0_45 = arith.constant 0 : index
    %176 = vector.load %arg3[%c0_44, %c0_45] : memref<8x128xf32, #tpu.memory_space<vmem>>, vector<8x128xf32>
    %c0_i32_46 = arith.constant 0 : i32
    %cst_47 = arith.constant dense<0.000000e+00> : vector<8x128xf32>
    %177 = tpu.matmul %170, %172, %cst_47 {dimension_numbers = #tpu.dot_dimension_numbers<[1], [0], [0], [1], [0, 0, 1, 1], [], []>} : vector<8x32xf32>, vector<32x128xf32>, vector<8x128xf32> -> vector<8x128xf32>
    %178 = arith.addf %176, %177 : vector<8x128xf32>
    %179 = vector.extract_strided_slice %178 {offsets = [0, 0], sizes = [8, 96], strides = [1, 1]} : vector<8x128xf32> to vector<8x96xf32>
    %180 = arith.negf %179 : vector<8x96xf32>
    %181 = math.exp %180 : vector<8x96xf32>
    %cst_48 = arith.constant 1.000000e+00 : f32
    %182 = vector.broadcast %cst_48 : f32 to vector<8x96xf32>
    %183 = arith.addf %182, %181 : vector<8x96xf32>
    %184 = arith.divf %182, %183 : vector<8x96xf32>
    %185 = vector.extract_strided_slice %184 {offsets = [0, 0], sizes = [8, 32], strides = [1, 1]} : vector<8x96xf32> to vector<8x32xf32>
    %186 = vector.extract_strided_slice %184 {offsets = [0, 32], sizes = [8, 32], strides = [1, 1]} : vector<8x96xf32> to vector<8x32xf32>
    %187 = vector.extract_strided_slice %184 {offsets = [0, 64], sizes = [8, 32], strides = [1, 1]} : vector<8x96xf32> to vector<8x32xf32>
    %188 = vector.extract_strided_slice %178 {offsets = [0, 96], sizes = [8, 32], strides = [1, 1]} : vector<8x128xf32> to vector<8x32xf32>
    %189 = math.tanh %188 : vector<8x32xf32>
    %190 = arith.mulf %186, %168 : vector<8x32xf32>
    %191 = arith.mulf %185, %189 : vector<8x32xf32>
    %192 = arith.addf %190, %191 : vector<8x32xf32>
    %193 = math.tanh %192 : vector<8x32xf32>
    %194 = arith.mulf %187, %193 : vector<8x32xf32>
    %cst_49 = arith.constant dense<0.000000e+00> : vector<8x32xf32>
    %195 = tpu.matmul %194, %174, %cst_49 {dimension_numbers = #tpu.dot_dimension_numbers<[1], [0], [0], [1], [0, 0, 1, 1], [], []>} : vector<8x32xf32>, vector<32x32xf32>, vector<8x32xf32> -> vector<8x32xf32>
    %196 = vector.broadcast %175 : vector<1x32xf32> to vector<8x32xf32>
    %197 = arith.addf %195, %196 : vector<8x32xf32>
    %198 = vector.shape_cast %197 : vector<8x32xf32> to vector<1x8x32xf32>
    %199 = arith.index_cast %c0_i32_46 : i32 to index
    %c0_50 = arith.constant 0 : index
    %c0_51 = arith.constant 0 : index
    %200 = vector.load %arg9[%199, %c0_50, %c0_51] : memref<9x8x32xf32, #tpu.memory_space<vmem>>, vector<1x8x32xf32>
    tpu.vector_store %arg9[%199, %c0_50, %c0_51], %198 {strides = array<i32>} : memref<9x8x32xf32, #tpu.memory_space<vmem>>, vector<1x8x32xf32>,
    %201 = tpu.iota {dimensions = array<i32: 1>} : vector<8x32xi32>
    %cst_52 = arith.constant dense<0xFF800000> : vector<8xf32>
    %202 = vector.multi_reduction <maximumf>, %197, %cst_52 [1] : vector<8x32xf32> to vector<8xf32>
    %203 = vector.shape_cast %202 : vector<8xf32> to vector<8x1xf32>
    %204 = vector.broadcast %203 : vector<8x1xf32> to vector<8x32xf32>
    %205 = arith.cmpf oeq, %197, %204 : vector<8x32xf32>
    %c32_i32 = arith.constant 32 : i32
    %206 = vector.broadcast %c32_i32 : i32 to vector<8x32xi32>
    %207 = arith.select %205, %201, %206 : vector<8x32xi1>, vector<8x32xi32>
    %cst_53 = arith.constant dense<2147483647> : vector<8xi32>
    %208 = vector.multi_reduction <minsi>, %207, %cst_53 [1] : vector<8x32xi32> to vector<8xi32>
    %209 = vector.shape_cast %208 : vector<8xi32> to vector<8x1xi32>
    %210 = vector.broadcast %209 : vector<8x1xi32> to vector<8x32xi32>
    %211 = arith.cmpi eq, %201, %210 : vector<8x32xi32>
    %212 = arith.extui %211 : vector<8x32xi1> to vector<8x32xi32>
    %213 = arith.sitofp %212 : vector<8x32xi32> to vector<8x32xf32>
    %cst_54 = arith.constant dense<0xFF800000> : vector<32xf32>
    %214 = vector.multi_reduction <maximumf>, %213, %cst_54 [0] : vector<8x32xf32> to vector<32xf32>
    %215 = vector.shape_cast %214 : vector<32xf32> to vector<1x32xf32>
    %cst_55 = arith.constant dense<0.000000e+00> : vector<1x128xf32>
    %216 = tpu.matmul %215, %171, %cst_55 {dimension_numbers = #tpu.dot_dimension_numbers<[1], [0], [0], [1], [0, 0, 1, 1], [], []>} : vector<1x32xf32>, vector<32x128xf32>, vector<1x128xf32> -> vector<1x128xf32>
    %217 = arith.addf %216, %173 : vector<1x128xf32>
    %218 = vector.shape_cast %217 : vector<1x128xf32> to vector<1x128xf32>
    %219 = vector.broadcast %218 : vector<1x128xf32> to vector<8x128xf32>
    %c1_i32_56 = arith.constant 1 : i32
    %cst_57 = arith.constant dense<0.000000e+00> : vector<8x128xf32>
    %220 = tpu.matmul %194, %172, %cst_57 {dimension_numbers = #tpu.dot_dimension_numbers<[1], [0], [0], [1], [0, 0, 1, 1], [], []>} : vector<8x32xf32>, vector<32x128xf32>, vector<8x128xf32> -> vector<8x128xf32>
    %221 = arith.addf %219, %220 : vector<8x128xf32>
    %222 = vector.extract_strided_slice %221 {offsets = [0, 0], sizes = [8, 96], strides = [1, 1]} : vector<8x128xf32> to vector<8x96xf32>
    %223 = arith.negf %222 : vector<8x96xf32>
    %224 = math.exp %223 : vector<8x96xf32>
    %cst_58 = arith.constant 1.000000e+00 : f32
    %225 = vector.broadcast %cst_58 : f32 to vector<8x96xf32>
    %226 = arith.addf %225, %224 : vector<8x96xf32>
    %227 = arith.divf %225, %226 : vector<8x96xf32>
    %228 = vector.extract_strided_slice %227 {offsets = [0, 0], sizes = [8, 32], strides = [1, 1]} : vector<8x96xf32> to vector<8x32xf32>
    %229 = vector.extract_strided_slice %227 {offsets = [0, 32], sizes = [8, 32], strides = [1, 1]} : vector<8x96xf32> to vector<8x32xf32>
    %230 = vector.extract_strided_slice %227 {offsets = [0, 64], sizes = [8, 32], strides = [1, 1]} : vector<8x96xf32> to vector<8x32xf32>
    %231 = vector.extract_strided_slice %221 {offsets = [0, 96], sizes = [8, 32], strides = [1, 1]} : vector<8x128xf32> to vector<8x32xf32>
    %232 = math.tanh %231 : vector<8x32xf32>
    %233 = arith.mulf %229, %192 : vector<8x32xf32>
    %234 = arith.mulf %228, %232 : vector<8x32xf32>
    %235 = arith.addf %233, %234 : vector<8x32xf32>
    %236 = math.tanh %235 : vector<8x32xf32>
    %237 = arith.mulf %230, %236 : vector<8x32xf32>
    %cst_59 = arith.constant dense<0.000000e+00> : vector<8x32xf32>
    %238 = tpu.matmul %237, %174, %cst_59 {dimension_numbers = #tpu.dot_dimension_numbers<[1], [0], [0], [1], [0, 0, 1, 1], [], []>} : vector<8x32xf32>, vector<32x32xf32>, vector<8x32xf32> -> vector<8x32xf32>
    %239 = vector.broadcast %175 : vector<1x32xf32> to vector<8x32xf32>
    %240 = arith.addf %238, %239 : vector<8x32xf32>
    %241 = vector.shape_cast %240 : vector<8x32xf32> to vector<1x8x32xf32>
    %242 = arith.index_cast %c1_i32_56 : i32 to index
    %c0_60 = arith.constant 0 : index
    %c0_61 = arith.constant 0 : index
    %243 = vector.load %arg9[%242, %c0_60, %c0_61] : memref<9x8x32xf32, #tpu.memory_space<vmem>>, vector<1x8x32xf32>
    tpu.vector_store %arg9[%242, %c0_60, %c0_61], %241 {strides = array<i32>} : memref<9x8x32xf32, #tpu.memory_space<vmem>>, vector<1x8x32xf32>,
    %244 = tpu.iota {dimensions = array<i32: 1>} : vector<8x32xi32>
    %cst_62 = arith.constant dense<0xFF800000> : vector<8xf32>
    %245 = vector.multi_reduction <maximumf>, %240, %cst_62 [1] : vector<8x32xf32> to vector<8xf32>
    %246 = vector.shape_cast %245 : vector<8xf32> to vector<8x1xf32>
    %247 = vector.broadcast %246 : vector<8x1xf32> to vector<8x32xf32>
    %248 = arith.cmpf oeq, %240, %247 : vector<8x32xf32>
    %c32_i32_63 = arith.constant 32 : i32
    %249 = vector.broadcast %c32_i32_63 : i32 to vector<8x32xi32>
    %250 = arith.select %248, %244, %249 : vector<8x32xi1>, vector<8x32xi32>
    %cst_64 = arith.constant dense<2147483647> : vector<8xi32>
    %251 = vector.multi_reduction <minsi>, %250, %cst_64 [1] : vector<8x32xi32> to vector<8xi32>
    %252 = vector.shape_cast %251 : vector<8xi32> to vector<8x1xi32>
    %253 = vector.broadcast %252 : vector<8x1xi32> to vector<8x32xi32>
    %254 = arith.cmpi eq, %244, %253 : vector<8x32xi32>
    %255 = arith.extui %254 : vector<8x32xi1> to vector<8x32xi32>
    %256 = arith.sitofp %255 : vector<8x32xi32> to vector<8x32xf32>
    %cst_65 = arith.constant dense<0xFF800000> : vector<32xf32>
    %257 = vector.multi_reduction <maximumf>, %256, %cst_65 [0] : vector<8x32xf32> to vector<32xf32>
    %258 = vector.shape_cast %257 : vector<32xf32> to vector<1x32xf32>
    %cst_66 = arith.constant dense<0.000000e+00> : vector<1x128xf32>
    %259 = tpu.matmul %258, %171, %cst_66 {dimension_numbers = #tpu.dot_dimension_numbers<[1], [0], [0], [1], [0, 0, 1, 1], [], []>} : vector<1x32xf32>, vector<32x128xf32>, vector<1x128xf32> -> vector<1x128xf32>
    %260 = arith.addf %259, %173 : vector<1x128xf32>
    %261 = vector.shape_cast %260 : vector<1x128xf32> to vector<1x128xf32>
    %262 = vector.broadcast %261 : vector<1x128xf32> to vector<8x128xf32>
    %c2_i32_67 = arith.constant 2 : i32
    %cst_68 = arith.constant dense<0.000000e+00> : vector<8x128xf32>
    %263 = tpu.matmul %237, %172, %cst_68 {dimension_numbers = #tpu.dot_dimension_numbers<[1], [0], [0], [1], [0, 0, 1, 1], [], []>} : vector<8x32xf32>, vector<32x128xf32>, vector<8x128xf32> -> vector<8x128xf32>
    %264 = arith.addf %262, %263 : vector<8x128xf32>
    %265 = vector.extract_strided_slice %264 {offsets = [0, 0], sizes = [8, 96], strides = [1, 1]} : vector<8x128xf32> to vector<8x96xf32>
    %266 = arith.negf %265 : vector<8x96xf32>
    %267 = math.exp %266 : vector<8x96xf32>
    %cst_69 = arith.constant 1.000000e+00 : f32
    %268 = vector.broadcast %cst_69 : f32 to vector<8x96xf32>
    %269 = arith.addf %268, %267 : vector<8x96xf32>
    %270 = arith.divf %268, %269 : vector<8x96xf32>
    %271 = vector.extract_strided_slice %270 {offsets = [0, 0], sizes = [8, 32], strides = [1, 1]} : vector<8x96xf32> to vector<8x32xf32>
    %272 = vector.extract_strided_slice %270 {offsets = [0, 32], sizes = [8, 32], strides = [1, 1]} : vector<8x96xf32> to vector<8x32xf32>
    %273 = vector.extract_strided_slice %270 {offsets = [0, 64], sizes = [8, 32], strides = [1, 1]} : vector<8x96xf32> to vector<8x32xf32>
    %274 = vector.extract_strided_slice %264 {offsets = [0, 96], sizes = [8, 32], strides = [1, 1]} : vector<8x128xf32> to vector<8x32xf32>
    %275 = math.tanh %274 : vector<8x32xf32>
    %276 = arith.mulf %272, %235 : vector<8x32xf32>
    %277 = arith.mulf %271, %275 : vector<8x32xf32>
    %278 = arith.addf %276, %277 : vector<8x32xf32>
    %279 = math.tanh %278 : vector<8x32xf32>
    %280 = arith.mulf %273, %279 : vector<8x32xf32>
    %cst_70 = arith.constant dense<0.000000e+00> : vector<8x32xf32>
    %281 = tpu.matmul %280, %174, %cst_70 {dimension_numbers = #tpu.dot_dimension_numbers<[1], [0], [0], [1], [0, 0, 1, 1], [], []>} : vector<8x32xf32>, vector<32x32xf32>, vector<8x32xf32> -> vector<8x32xf32>
    %282 = vector.broadcast %175 : vector<1x32xf32> to vector<8x32xf32>
    %283 = arith.addf %281, %282 : vector<8x32xf32>
    %284 = vector.shape_cast %283 : vector<8x32xf32> to vector<1x8x32xf32>
    %285 = arith.index_cast %c2_i32_67 : i32 to index
    %c0_71 = arith.constant 0 : index
    %c0_72 = arith.constant 0 : index
    %286 = vector.load %arg9[%285, %c0_71, %c0_72] : memref<9x8x32xf32, #tpu.memory_space<vmem>>, vector<1x8x32xf32>
    tpu.vector_store %arg9[%285, %c0_71, %c0_72], %284 {strides = array<i32>} : memref<9x8x32xf32, #tpu.memory_space<vmem>>, vector<1x8x32xf32>,
    %287 = tpu.iota {dimensions = array<i32: 1>} : vector<8x32xi32>
    %cst_73 = arith.constant dense<0xFF800000> : vector<8xf32>
    %288 = vector.multi_reduction <maximumf>, %283, %cst_73 [1] : vector<8x32xf32> to vector<8xf32>
    %289 = vector.shape_cast %288 : vector<8xf32> to vector<8x1xf32>
    %290 = vector.broadcast %289 : vector<8x1xf32> to vector<8x32xf32>
    %291 = arith.cmpf oeq, %283, %290 : vector<8x32xf32>
    %c32_i32_74 = arith.constant 32 : i32
    %292 = vector.broadcast %c32_i32_74 : i32 to vector<8x32xi32>
    %293 = arith.select %291, %287, %292 : vector<8x32xi1>, vector<8x32xi32>
    %cst_75 = arith.constant dense<2147483647> : vector<8xi32>
    %294 = vector.multi_reduction <minsi>, %293, %cst_75 [1] : vector<8x32xi32> to vector<8xi32>
    %295 = vector.shape_cast %294 : vector<8xi32> to vector<8x1xi32>
    %296 = vector.broadcast %295 : vector<8x1xi32> to vector<8x32xi32>
    %297 = arith.cmpi eq, %287, %296 : vector<8x32xi32>
    %298 = arith.extui %297 : vector<8x32xi1> to vector<8x32xi32>
    %299 = arith.sitofp %298 : vector<8x32xi32> to vector<8x32xf32>
    %cst_76 = arith.constant dense<0xFF800000> : vector<32xf32>
    %300 = vector.multi_reduction <maximumf>, %299, %cst_76 [0] : vector<8x32xf32> to vector<32xf32>
    %301 = vector.shape_cast %300 : vector<32xf32> to vector<1x32xf32>
    %cst_77 = arith.constant dense<0.000000e+00> : vector<1x128xf32>
    %302 = tpu.matmul %301, %171, %cst_77 {dimension_numbers = #tpu.dot_dimension_numbers<[1], [0], [0], [1], [0, 0, 1, 1], [], []>} : vector<1x32xf32>, vector<32x128xf32>, vector<1x128xf32> -> vector<1x128xf32>
    %303 = arith.addf %302, %173 : vector<1x128xf32>
    %304 = vector.shape_cast %303 : vector<1x128xf32> to vector<1x128xf32>
    %305 = vector.broadcast %304 : vector<1x128xf32> to vector<8x128xf32>
    %c3_i32_78 = arith.constant 3 : i32
    %cst_79 = arith.constant dense<0.000000e+00> : vector<8x128xf32>
    %306 = tpu.matmul %280, %172, %cst_79 {dimension_numbers = #tpu.dot_dimension_numbers<[1], [0], [0], [1], [0, 0, 1, 1], [], []>} : vector<8x32xf32>, vector<32x128xf32>, vector<8x128xf32> -> vector<8x128xf32>
    %307 = arith.addf %305, %306 : vector<8x128xf32>
    %308 = vector.extract_strided_slice %307 {offsets = [0, 0], sizes = [8, 96], strides = [1, 1]} : vector<8x128xf32> to vector<8x96xf32>
    %309 = arith.negf %308 : vector<8x96xf32>
    %310 = math.exp %309 : vector<8x96xf32>
    %cst_80 = arith.constant 1.000000e+00 : f32
    %311 = vector.broadcast %cst_80 : f32 to vector<8x96xf32>
    %312 = arith.addf %311, %310 : vector<8x96xf32>
    %313 = arith.divf %311, %312 : vector<8x96xf32>
    %314 = vector.extract_strided_slice %313 {offsets = [0, 0], sizes = [8, 32], strides = [1, 1]} : vector<8x96xf32> to vector<8x32xf32>
    %315 = vector.extract_strided_slice %313 {offsets = [0, 32], sizes = [8, 32], strides = [1, 1]} : vector<8x96xf32> to vector<8x32xf32>
    %316 = vector.extract_strided_slice %313 {offsets = [0, 64], sizes = [8, 32], strides = [1, 1]} : vector<8x96xf32> to vector<8x32xf32>
    %317 = vector.extract_strided_slice %307 {offsets = [0, 96], sizes = [8, 32], strides = [1, 1]} : vector<8x128xf32> to vector<8x32xf32>
    %318 = math.tanh %317 : vector<8x32xf32>
    %319 = arith.mulf %315, %278 : vector<8x32xf32>
    %320 = arith.mulf %314, %318 : vector<8x32xf32>
    %321 = arith.addf %319, %320 : vector<8x32xf32>
    %322 = math.tanh %321 : vector<8x32xf32>
    %323 = arith.mulf %316, %322 : vector<8x32xf32>
    %cst_81 = arith.constant dense<0.000000e+00> : vector<8x32xf32>
    %324 = tpu.matmul %323, %174, %cst_81 {dimension_numbers = #tpu.dot_dimension_numbers<[1], [0], [0], [1], [0, 0, 1, 1], [], []>} : vector<8x32xf32>, vector<32x32xf32>, vector<8x32xf32> -> vector<8x32xf32>
    %325 = vector.broadcast %175 : vector<1x32xf32> to vector<8x32xf32>
    %326 = arith.addf %324, %325 : vector<8x32xf32>
    %327 = vector.shape_cast %326 : vector<8x32xf32> to vector<1x8x32xf32>
    %328 = arith.index_cast %c3_i32_78 : i32 to index
    %c0_82 = arith.constant 0 : index
    %c0_83 = arith.constant 0 : index
    %329 = vector.load %arg9[%328, %c0_82, %c0_83] : memref<9x8x32xf32, #tpu.memory_space<vmem>>, vector<1x8x32xf32>
    tpu.vector_store %arg9[%328, %c0_82, %c0_83], %327 {strides = array<i32>} : memref<9x8x32xf32, #tpu.memory_space<vmem>>, vector<1x8x32xf32>,
    %330 = tpu.iota {dimensions = array<i32: 1>} : vector<8x32xi32>
    %cst_84 = arith.constant dense<0xFF800000> : vector<8xf32>
    %331 = vector.multi_reduction <maximumf>, %326, %cst_84 [1] : vector<8x32xf32> to vector<8xf32>
    %332 = vector.shape_cast %331 : vector<8xf32> to vector<8x1xf32>
    %333 = vector.broadcast %332 : vector<8x1xf32> to vector<8x32xf32>
    %334 = arith.cmpf oeq, %326, %333 : vector<8x32xf32>
    %c32_i32_85 = arith.constant 32 : i32
    %335 = vector.broadcast %c32_i32_85 : i32 to vector<8x32xi32>
    %336 = arith.select %334, %330, %335 : vector<8x32xi1>, vector<8x32xi32>
    %cst_86 = arith.constant dense<2147483647> : vector<8xi32>
    %337 = vector.multi_reduction <minsi>, %336, %cst_86 [1] : vector<8x32xi32> to vector<8xi32>
    %338 = vector.shape_cast %337 : vector<8xi32> to vector<8x1xi32>
    %339 = vector.broadcast %338 : vector<8x1xi32> to vector<8x32xi32>
    %340 = arith.cmpi eq, %330, %339 : vector<8x32xi32>
    %341 = arith.extui %340 : vector<8x32xi1> to vector<8x32xi32>
    %342 = arith.sitofp %341 : vector<8x32xi32> to vector<8x32xf32>
    %cst_87 = arith.constant dense<0xFF800000> : vector<32xf32>
    %343 = vector.multi_reduction <maximumf>, %342, %cst_87 [0] : vector<8x32xf32> to vector<32xf32>
    %344 = vector.shape_cast %343 : vector<32xf32> to vector<1x32xf32>
    %cst_88 = arith.constant dense<0.000000e+00> : vector<1x128xf32>
    %345 = tpu.matmul %344, %171, %cst_88 {dimension_numbers = #tpu.dot_dimension_numbers<[1], [0], [0], [1], [0, 0, 1, 1], [], []>} : vector<1x32xf32>, vector<32x128xf32>, vector<1x128xf32> -> vector<1x128xf32>
    %346 = arith.addf %345, %173 : vector<1x128xf32>
    %347 = vector.shape_cast %346 : vector<1x128xf32> to vector<1x128xf32>
    %348 = vector.broadcast %347 : vector<1x128xf32> to vector<8x128xf32>
    %c4_i32_89 = arith.constant 4 : i32
    %cst_90 = arith.constant dense<0.000000e+00> : vector<8x128xf32>
    %349 = tpu.matmul %323, %172, %cst_90 {dimension_numbers = #tpu.dot_dimension_numbers<[1], [0], [0], [1], [0, 0, 1, 1], [], []>} : vector<8x32xf32>, vector<32x128xf32>, vector<8x128xf32> -> vector<8x128xf32>
    %350 = arith.addf %348, %349 : vector<8x128xf32>
    %351 = vector.extract_strided_slice %350 {offsets = [0, 0], sizes = [8, 96], strides = [1, 1]} : vector<8x128xf32> to vector<8x96xf32>
    %352 = arith.negf %351 : vector<8x96xf32>
    %353 = math.exp %352 : vector<8x96xf32>
    %cst_91 = arith.constant 1.000000e+00 : f32
    %354 = vector.broadcast %cst_91 : f32 to vector<8x96xf32>
    %355 = arith.addf %354, %353 : vector<8x96xf32>
    %356 = arith.divf %354, %355 : vector<8x96xf32>
    %357 = vector.extract_strided_slice %356 {offsets = [0, 0], sizes = [8, 32], strides = [1, 1]} : vector<8x96xf32> to vector<8x32xf32>
    %358 = vector.extract_strided_slice %356 {offsets = [0, 32], sizes = [8, 32], strides = [1, 1]} : vector<8x96xf32> to vector<8x32xf32>
    %359 = vector.extract_strided_slice %356 {offsets = [0, 64], sizes = [8, 32], strides = [1, 1]} : vector<8x96xf32> to vector<8x32xf32>
    %360 = vector.extract_strided_slice %350 {offsets = [0, 96], sizes = [8, 32], strides = [1, 1]} : vector<8x128xf32> to vector<8x32xf32>
    %361 = math.tanh %360 : vector<8x32xf32>
    %362 = arith.mulf %358, %321 : vector<8x32xf32>
    %363 = arith.mulf %357, %361 : vector<8x32xf32>
    %364 = arith.addf %362, %363 : vector<8x32xf32>
    %365 = math.tanh %364 : vector<8x32xf32>
    %366 = arith.mulf %359, %365 : vector<8x32xf32>
    %cst_92 = arith.constant dense<0.000000e+00> : vector<8x32xf32>
    %367 = tpu.matmul %366, %174, %cst_92 {dimension_numbers = #tpu.dot_dimension_numbers<[1], [0], [0], [1], [0, 0, 1, 1], [], []>} : vector<8x32xf32>, vector<32x32xf32>, vector<8x32xf32> -> vector<8x32xf32>
    %368 = vector.broadcast %175 : vector<1x32xf32> to vector<8x32xf32>
    %369 = arith.addf %367, %368 : vector<8x32xf32>
    %370 = vector.shape_cast %369 : vector<8x32xf32> to vector<1x8x32xf32>
    %371 = arith.index_cast %c4_i32_89 : i32 to index
    %c0_93 = arith.constant 0 : index
    %c0_94 = arith.constant 0 : index
    %372 = vector.load %arg9[%371, %c0_93, %c0_94] : memref<9x8x32xf32, #tpu.memory_space<vmem>>, vector<1x8x32xf32>
    tpu.vector_store %arg9[%371, %c0_93, %c0_94], %370 {strides = array<i32>} : memref<9x8x32xf32, #tpu.memory_space<vmem>>, vector<1x8x32xf32>,
    %373 = tpu.iota {dimensions = array<i32: 1>} : vector<8x32xi32>
    %cst_95 = arith.constant dense<0xFF800000> : vector<8xf32>
    %374 = vector.multi_reduction <maximumf>, %369, %cst_95 [1] : vector<8x32xf32> to vector<8xf32>
    %375 = vector.shape_cast %374 : vector<8xf32> to vector<8x1xf32>
    %376 = vector.broadcast %375 : vector<8x1xf32> to vector<8x32xf32>
    %377 = arith.cmpf oeq, %369, %376 : vector<8x32xf32>
    %c32_i32_96 = arith.constant 32 : i32
    %378 = vector.broadcast %c32_i32_96 : i32 to vector<8x32xi32>
    %379 = arith.select %377, %373, %378 : vector<8x32xi1>, vector<8x32xi32>
    %cst_97 = arith.constant dense<2147483647> : vector<8xi32>
    %380 = vector.multi_reduction <minsi>, %379, %cst_97 [1] : vector<8x32xi32> to vector<8xi32>
    %381 = vector.shape_cast %380 : vector<8xi32> to vector<8x1xi32>
    %382 = vector.broadcast %381 : vector<8x1xi32> to vector<8x32xi32>
    %383 = arith.cmpi eq, %373, %382 : vector<8x32xi32>
    %384 = arith.extui %383 : vector<8x32xi1> to vector<8x32xi32>
    %385 = arith.sitofp %384 : vector<8x32xi32> to vector<8x32xf32>
    %cst_98 = arith.constant dense<0xFF800000> : vector<32xf32>
    %386 = vector.multi_reduction <maximumf>, %385, %cst_98 [0] : vector<8x32xf32> to vector<32xf32>
    %387 = vector.shape_cast %386 : vector<32xf32> to vector<1x32xf32>
    %cst_99 = arith.constant dense<0.000000e+00> : vector<1x128xf32>
    %388 = tpu.matmul %387, %171, %cst_99 {dimension_numbers = #tpu.dot_dimension_numbers<[1], [0], [0], [1], [0, 0, 1, 1], [], []>} : vector<1x32xf32>, vector<32x128xf32>, vector<1x128xf32> -> vector<1x128xf32>
    %389 = arith.addf %388, %173 : vector<1x128xf32>
    %390 = vector.shape_cast %389 : vector<1x128xf32> to vector<1x128xf32>
    %391 = vector.broadcast %390 : vector<1x128xf32> to vector<8x128xf32>
    %c5_i32_100 = arith.constant 5 : i32
    %cst_101 = arith.constant dense<0.000000e+00> : vector<8x128xf32>
    %392 = tpu.matmul %366, %172, %cst_101 {dimension_numbers = #tpu.dot_dimension_numbers<[1], [0], [0], [1], [0, 0, 1, 1], [], []>} : vector<8x32xf32>, vector<32x128xf32>, vector<8x128xf32> -> vector<8x128xf32>
    %393 = arith.addf %391, %392 : vector<8x128xf32>
    %394 = vector.extract_strided_slice %393 {offsets = [0, 0], sizes = [8, 96], strides = [1, 1]} : vector<8x128xf32> to vector<8x96xf32>
    %395 = arith.negf %394 : vector<8x96xf32>
    %396 = math.exp %395 : vector<8x96xf32>
    %cst_102 = arith.constant 1.000000e+00 : f32
    %397 = vector.broadcast %cst_102 : f32 to vector<8x96xf32>
    %398 = arith.addf %397, %396 : vector<8x96xf32>
    %399 = arith.divf %397, %398 : vector<8x96xf32>
    %400 = vector.extract_strided_slice %399 {offsets = [0, 0], sizes = [8, 32], strides = [1, 1]} : vector<8x96xf32> to vector<8x32xf32>
    %401 = vector.extract_strided_slice %399 {offsets = [0, 32], sizes = [8, 32], strides = [1, 1]} : vector<8x96xf32> to vector<8x32xf32>
    %402 = vector.extract_strided_slice %399 {offsets = [0, 64], sizes = [8, 32], strides = [1, 1]} : vector<8x96xf32> to vector<8x32xf32>
    %403 = vector.extract_strided_slice %393 {offsets = [0, 96], sizes = [8, 32], strides = [1, 1]} : vector<8x128xf32> to vector<8x32xf32>
    %404 = math.tanh %403 : vector<8x32xf32>
    %405 = arith.mulf %401, %364 : vector<8x32xf32>
    %406 = arith.mulf %400, %404 : vector<8x32xf32>
    %407 = arith.addf %405, %406 : vector<8x32xf32>
    %408 = math.tanh %407 : vector<8x32xf32>
    %409 = arith.mulf %402, %408 : vector<8x32xf32>
    %cst_103 = arith.constant dense<0.000000e+00> : vector<8x32xf32>
    %410 = tpu.matmul %409, %174, %cst_103 {dimension_numbers = #tpu.dot_dimension_numbers<[1], [0], [0], [1], [0, 0, 1, 1], [], []>} : vector<8x32xf32>, vector<32x32xf32>, vector<8x32xf32> -> vector<8x32xf32>
    %411 = vector.broadcast %175 : vector<1x32xf32> to vector<8x32xf32>
    %412 = arith.addf %410, %411 : vector<8x32xf32>
    %413 = vector.shape_cast %412 : vector<8x32xf32> to vector<1x8x32xf32>
    %414 = arith.index_cast %c5_i32_100 : i32 to index
    %c0_104 = arith.constant 0 : index
    %c0_105 = arith.constant 0 : index
    %415 = vector.load %arg9[%414, %c0_104, %c0_105] : memref<9x8x32xf32, #tpu.memory_space<vmem>>, vector<1x8x32xf32>
    tpu.vector_store %arg9[%414, %c0_104, %c0_105], %413 {strides = array<i32>} : memref<9x8x32xf32, #tpu.memory_space<vmem>>, vector<1x8x32xf32>,
    %416 = tpu.iota {dimensions = array<i32: 1>} : vector<8x32xi32>
    %cst_106 = arith.constant dense<0xFF800000> : vector<8xf32>
    %417 = vector.multi_reduction <maximumf>, %412, %cst_106 [1] : vector<8x32xf32> to vector<8xf32>
    %418 = vector.shape_cast %417 : vector<8xf32> to vector<8x1xf32>
    %419 = vector.broadcast %418 : vector<8x1xf32> to vector<8x32xf32>
    %420 = arith.cmpf oeq, %412, %419 : vector<8x32xf32>
    %c32_i32_107 = arith.constant 32 : i32
    %421 = vector.broadcast %c32_i32_107 : i32 to vector<8x32xi32>
    %422 = arith.select %420, %416, %421 : vector<8x32xi1>, vector<8x32xi32>
    %cst_108 = arith.constant dense<2147483647> : vector<8xi32>
    %423 = vector.multi_reduction <minsi>, %422, %cst_108 [1] : vector<8x32xi32> to vector<8xi32>
    %424 = vector.shape_cast %423 : vector<8xi32> to vector<8x1xi32>
    %425 = vector.broadcast %424 : vector<8x1xi32> to vector<8x32xi32>
    %426 = arith.cmpi eq, %416, %425 : vector<8x32xi32>
    %427 = arith.extui %426 : vector<8x32xi1> to vector<8x32xi32>
    %428 = arith.sitofp %427 : vector<8x32xi32> to vector<8x32xf32>
    %cst_109 = arith.constant dense<0xFF800000> : vector<32xf32>
    %429 = vector.multi_reduction <maximumf>, %428, %cst_109 [0] : vector<8x32xf32> to vector<32xf32>
    %430 = vector.shape_cast %429 : vector<32xf32> to vector<1x32xf32>
    %cst_110 = arith.constant dense<0.000000e+00> : vector<1x128xf32>
    %431 = tpu.matmul %430, %171, %cst_110 {dimension_numbers = #tpu.dot_dimension_numbers<[1], [0], [0], [1], [0, 0, 1, 1], [], []>} : vector<1x32xf32>, vector<32x128xf32>, vector<1x128xf32> -> vector<1x128xf32>
    %432 = arith.addf %431, %173 : vector<1x128xf32>
    %433 = vector.shape_cast %432 : vector<1x128xf32> to vector<1x128xf32>
    %434 = vector.broadcast %433 : vector<1x128xf32> to vector<8x128xf32>
    %c6_i32_111 = arith.constant 6 : i32
    %cst_112 = arith.constant dense<0.000000e+00> : vector<8x128xf32>
    %435 = tpu.matmul %409, %172, %cst_112 {dimension_numbers = #tpu.dot_dimension_numbers<[1], [0], [0], [1], [0, 0, 1, 1], [], []>} : vector<8x32xf32>, vector<32x128xf32>, vector<8x128xf32> -> vector<8x128xf32>
    %436 = arith.addf %434, %435 : vector<8x128xf32>
    %437 = vector.extract_strided_slice %436 {offsets = [0, 0], sizes = [8, 96], strides = [1, 1]} : vector<8x128xf32> to vector<8x96xf32>
    %438 = arith.negf %437 : vector<8x96xf32>
    %439 = math.exp %438 : vector<8x96xf32>
    %cst_113 = arith.constant 1.000000e+00 : f32
    %440 = vector.broadcast %cst_113 : f32 to vector<8x96xf32>
    %441 = arith.addf %440, %439 : vector<8x96xf32>
    %442 = arith.divf %440, %441 : vector<8x96xf32>
    %443 = vector.extract_strided_slice %442 {offsets = [0, 0], sizes = [8, 32], strides = [1, 1]} : vector<8x96xf32> to vector<8x32xf32>
    %444 = vector.extract_strided_slice %442 {offsets = [0, 32], sizes = [8, 32], strides = [1, 1]} : vector<8x96xf32> to vector<8x32xf32>
    %445 = vector.extract_strided_slice %442 {offsets = [0, 64], sizes = [8, 32], strides = [1, 1]} : vector<8x96xf32> to vector<8x32xf32>
    %446 = vector.extract_strided_slice %436 {offsets = [0, 96], sizes = [8, 32], strides = [1, 1]} : vector<8x128xf32> to vector<8x32xf32>
    %447 = math.tanh %446 : vector<8x32xf32>
    %448 = arith.mulf %444, %407 : vector<8x32xf32>
    %449 = arith.mulf %443, %447 : vector<8x32xf32>
    %450 = arith.addf %448, %449 : vector<8x32xf32>
    %451 = math.tanh %450 : vector<8x32xf32>
    %452 = arith.mulf %445, %451 : vector<8x32xf32>
    %cst_114 = arith.constant dense<0.000000e+00> : vector<8x32xf32>
    %453 = tpu.matmul %452, %174, %cst_114 {dimension_numbers = #tpu.dot_dimension_numbers<[1], [0], [0], [1], [0, 0, 1, 1], [], []>} : vector<8x32xf32>, vector<32x32xf32>, vector<8x32xf32> -> vector<8x32xf32>
    %454 = vector.broadcast %175 : vector<1x32xf32> to vector<8x32xf32>
    %455 = arith.addf %453, %454 : vector<8x32xf32>
    %456 = vector.shape_cast %455 : vector<8x32xf32> to vector<1x8x32xf32>
    %457 = arith.index_cast %c6_i32_111 : i32 to index
    %c0_115 = arith.constant 0 : index
    %c0_116 = arith.constant 0 : index
    %458 = vector.load %arg9[%457, %c0_115, %c0_116] : memref<9x8x32xf32, #tpu.memory_space<vmem>>, vector<1x8x32xf32>
    tpu.vector_store %arg9[%457, %c0_115, %c0_116], %456 {strides = array<i32>} : memref<9x8x32xf32, #tpu.memory_space<vmem>>, vector<1x8x32xf32>,
    %459 = tpu.iota {dimensions = array<i32: 1>} : vector<8x32xi32>
    %cst_117 = arith.constant dense<0xFF800000> : vector<8xf32>
    %460 = vector.multi_reduction <maximumf>, %455, %cst_117 [1] : vector<8x32xf32> to vector<8xf32>
    %461 = vector.shape_cast %460 : vector<8xf32> to vector<8x1xf32>
    %462 = vector.broadcast %461 : vector<8x1xf32> to vector<8x32xf32>
    %463 = arith.cmpf oeq, %455, %462 : vector<8x32xf32>
    %c32_i32_118 = arith.constant 32 : i32
    %464 = vector.broadcast %c32_i32_118 : i32 to vector<8x32xi32>
    %465 = arith.select %463, %459, %464 : vector<8x32xi1>, vector<8x32xi32>
    %cst_119 = arith.constant dense<2147483647> : vector<8xi32>
    %466 = vector.multi_reduction <minsi>, %465, %cst_119 [1] : vector<8x32xi32> to vector<8xi32>
    %467 = vector.shape_cast %466 : vector<8xi32> to vector<8x1xi32>
    %468 = vector.broadcast %467 : vector<8x1xi32> to vector<8x32xi32>
    %469 = arith.cmpi eq, %459, %468 : vector<8x32xi32>
    %470 = arith.extui %469 : vector<8x32xi1> to vector<8x32xi32>
    %471 = arith.sitofp %470 : vector<8x32xi32> to vector<8x32xf32>
    %cst_120 = arith.constant dense<0xFF800000> : vector<32xf32>
    %472 = vector.multi_reduction <maximumf>, %471, %cst_120 [0] : vector<8x32xf32> to vector<32xf32>
    %473 = vector.shape_cast %472 : vector<32xf32> to vector<1x32xf32>
    %cst_121 = arith.constant dense<0.000000e+00> : vector<1x128xf32>
    %474 = tpu.matmul %473, %171, %cst_121 {dimension_numbers = #tpu.dot_dimension_numbers<[1], [0], [0], [1], [0, 0, 1, 1], [], []>} : vector<1x32xf32>, vector<32x128xf32>, vector<1x128xf32> -> vector<1x128xf32>
    %475 = arith.addf %474, %173 : vector<1x128xf32>
    %476 = vector.shape_cast %475 : vector<1x128xf32> to vector<1x128xf32>
    %477 = vector.broadcast %476 : vector<1x128xf32> to vector<8x128xf32>
    %c7_i32_122 = arith.constant 7 : i32
    %cst_123 = arith.constant dense<0.000000e+00> : vector<8x128xf32>
    %478 = tpu.matmul %452, %172, %cst_123 {dimension_numbers = #tpu.dot_dimension_numbers<[1], [0], [0], [1], [0, 0, 1, 1], [], []>} : vector<8x32xf32>, vector<32x128xf32>, vector<8x128xf32> -> vector<8x128xf32>
    %479 = arith.addf %477, %478 : vector<8x128xf32>
    %480 = vector.extract_strided_slice %479 {offsets = [0, 0], sizes = [8, 96], strides = [1, 1]} : vector<8x128xf32> to vector<8x96xf32>
    %481 = arith.negf %480 : vector<8x96xf32>
    %482 = math.exp %481 : vector<8x96xf32>
    %cst_124 = arith.constant 1.000000e+00 : f32
    %483 = vector.broadcast %cst_124 : f32 to vector<8x96xf32>
    %484 = arith.addf %483, %482 : vector<8x96xf32>
    %485 = arith.divf %483, %484 : vector<8x96xf32>
    %486 = vector.extract_strided_slice %485 {offsets = [0, 0], sizes = [8, 32], strides = [1, 1]} : vector<8x96xf32> to vector<8x32xf32>
    %487 = vector.extract_strided_slice %485 {offsets = [0, 32], sizes = [8, 32], strides = [1, 1]} : vector<8x96xf32> to vector<8x32xf32>
    %488 = vector.extract_strided_slice %485 {offsets = [0, 64], sizes = [8, 32], strides = [1, 1]} : vector<8x96xf32> to vector<8x32xf32>
    %489 = vector.extract_strided_slice %479 {offsets = [0, 96], sizes = [8, 32], strides = [1, 1]} : vector<8x128xf32> to vector<8x32xf32>
    %490 = math.tanh %489 : vector<8x32xf32>
    %491 = arith.mulf %487, %450 : vector<8x32xf32>
    %492 = arith.mulf %486, %490 : vector<8x32xf32>
    %493 = arith.addf %491, %492 : vector<8x32xf32>
    %494 = math.tanh %493 : vector<8x32xf32>
    %495 = arith.mulf %488, %494 : vector<8x32xf32>
    %cst_125 = arith.constant dense<0.000000e+00> : vector<8x32xf32>
    %496 = tpu.matmul %495, %174, %cst_125 {dimension_numbers = #tpu.dot_dimension_numbers<[1], [0], [0], [1], [0, 0, 1, 1], [], []>} : vector<8x32xf32>, vector<32x32xf32>, vector<8x32xf32> -> vector<8x32xf32>
    %497 = vector.broadcast %175 : vector<1x32xf32> to vector<8x32xf32>
    %498 = arith.addf %496, %497 : vector<8x32xf32>
    %499 = vector.shape_cast %498 : vector<8x32xf32> to vector<1x8x32xf32>
    %500 = arith.index_cast %c7_i32_122 : i32 to index
    %c0_126 = arith.constant 0 : index
    %c0_127 = arith.constant 0 : index
    %501 = vector.load %arg9[%500, %c0_126, %c0_127] : memref<9x8x32xf32, #tpu.memory_space<vmem>>, vector<1x8x32xf32>
    tpu.vector_store %arg9[%500, %c0_126, %c0_127], %499 {strides = array<i32>} : memref<9x8x32xf32, #tpu.memory_space<vmem>>, vector<1x8x32xf32>,
    %502 = tpu.iota {dimensions = array<i32: 1>} : vector<8x32xi32>
    %cst_128 = arith.constant dense<0xFF800000> : vector<8xf32>
    %503 = vector.multi_reduction <maximumf>, %498, %cst_128 [1] : vector<8x32xf32> to vector<8xf32>
    %504 = vector.shape_cast %503 : vector<8xf32> to vector<8x1xf32>
    %505 = vector.broadcast %504 : vector<8x1xf32> to vector<8x32xf32>
    %506 = arith.cmpf oeq, %498, %505 : vector<8x32xf32>
    %c32_i32_129 = arith.constant 32 : i32
    %507 = vector.broadcast %c32_i32_129 : i32 to vector<8x32xi32>
    %508 = arith.select %506, %502, %507 : vector<8x32xi1>, vector<8x32xi32>
    %cst_130 = arith.constant dense<2147483647> : vector<8xi32>
    %509 = vector.multi_reduction <minsi>, %508, %cst_130 [1] : vector<8x32xi32> to vector<8xi32>
    %510 = vector.shape_cast %509 : vector<8xi32> to vector<8x1xi32>
    %511 = vector.broadcast %510 : vector<8x1xi32> to vector<8x32xi32>
    %512 = arith.cmpi eq, %502, %511 : vector<8x32xi32>
    %513 = arith.extui %512 : vector<8x32xi1> to vector<8x32xi32>
    %514 = arith.sitofp %513 : vector<8x32xi32> to vector<8x32xf32>
    %cst_131 = arith.constant dense<0xFF800000> : vector<32xf32>
    %515 = vector.multi_reduction <maximumf>, %514, %cst_131 [0] : vector<8x32xf32> to vector<32xf32>
    %516 = vector.shape_cast %515 : vector<32xf32> to vector<1x32xf32>
    %cst_132 = arith.constant dense<0.000000e+00> : vector<1x128xf32>
    %517 = tpu.matmul %516, %171, %cst_132 {dimension_numbers = #tpu.dot_dimension_numbers<[1], [0], [0], [1], [0, 0, 1, 1], [], []>} : vector<1x32xf32>, vector<32x128xf32>, vector<1x128xf32> -> vector<1x128xf32>
    %518 = arith.addf %517, %173 : vector<1x128xf32>
    %519 = vector.shape_cast %518 : vector<1x128xf32> to vector<1x128xf32>
    %520 = vector.broadcast %519 : vector<1x128xf32> to vector<8x128xf32>
    %c8_i32_133 = arith.constant 8 : i32
    %cst_134 = arith.constant dense<0.000000e+00> : vector<8x128xf32>
    %521 = tpu.matmul %495, %172, %cst_134 {dimension_numbers = #tpu.dot_dimension_numbers<[1], [0], [0], [1], [0, 0, 1, 1], [], []>} : vector<8x32xf32>, vector<32x128xf32>, vector<8x128xf32> -> vector<8x128xf32>
    %522 = arith.addf %520, %521 : vector<8x128xf32>
    %523 = vector.extract_strided_slice %522 {offsets = [0, 0], sizes = [8, 96], strides = [1, 1]} : vector<8x128xf32> to vector<8x96xf32>
    %524 = arith.negf %523 : vector<8x96xf32>
    %525 = math.exp %524 : vector<8x96xf32>
    %cst_135 = arith.constant 1.000000e+00 : f32
    %526 = vector.broadcast %cst_135 : f32 to vector<8x96xf32>
    %527 = arith.addf %526, %525 : vector<8x96xf32>
    %528 = arith.divf %526, %527 : vector<8x96xf32>
    %529 = vector.extract_strided_slice %528 {offsets = [0, 0], sizes = [8, 32], strides = [1, 1]} : vector<8x96xf32> to vector<8x32xf32>
    %530 = vector.extract_strided_slice %528 {offsets = [0, 32], sizes = [8, 32], strides = [1, 1]} : vector<8x96xf32> to vector<8x32xf32>
    %531 = vector.extract_strided_slice %528 {offsets = [0, 64], sizes = [8, 32], strides = [1, 1]} : vector<8x96xf32> to vector<8x32xf32>
    %532 = vector.extract_strided_slice %522 {offsets = [0, 96], sizes = [8, 32], strides = [1, 1]} : vector<8x128xf32> to vector<8x32xf32>
    %533 = math.tanh %532 : vector<8x32xf32>
    %534 = arith.mulf %530, %493 : vector<8x32xf32>
    %535 = arith.mulf %529, %533 : vector<8x32xf32>
    %536 = arith.addf %534, %535 : vector<8x32xf32>
    %537 = math.tanh %536 : vector<8x32xf32>
    %538 = arith.mulf %531, %537 : vector<8x32xf32>
    %cst_136 = arith.constant dense<0.000000e+00> : vector<8x32xf32>
    %539 = tpu.matmul %538, %174, %cst_136 {dimension_numbers = #tpu.dot_dimension_numbers<[1], [0], [0], [1], [0, 0, 1, 1], [], []>} : vector<8x32xf32>, vector<32x32xf32>, vector<8x32xf32> -> vector<8x32xf32>
    %540 = vector.broadcast %175 : vector<1x32xf32> to vector<8x32xf32>
    %541 = arith.addf %539, %540 : vector<8x32xf32>
    %542 = vector.shape_cast %541 : vector<8x32xf32> to vector<1x8x32xf32>
    %543 = arith.index_cast %c8_i32_133 : i32 to index
    %c0_137 = arith.constant 0 : index
    %c0_138 = arith.constant 0 : index
    %544 = vector.load %arg9[%543, %c0_137, %c0_138] : memref<9x8x32xf32, #tpu.memory_space<vmem>>, vector<1x8x32xf32>
    tpu.vector_store %arg9[%543, %c0_137, %c0_138], %542 {strides = array<i32>} : memref<9x8x32xf32, #tpu.memory_space<vmem>>, vector<1x8x32xf32>,
    %545 = tpu.iota {dimensions = array<i32: 1>} : vector<8x32xi32>
    %cst_139 = arith.constant dense<0xFF800000> : vector<8xf32>
    %546 = vector.multi_reduction <maximumf>, %541, %cst_139 [1] : vector<8x32xf32> to vector<8xf32>
    %547 = vector.shape_cast %546 : vector<8xf32> to vector<8x1xf32>
    %548 = vector.broadcast %547 : vector<8x1xf32> to vector<8x32xf32>
    %549 = arith.cmpf oeq, %541, %548 : vector<8x32xf32>
    %c32_i32_140 = arith.constant 32 : i32
    %550 = vector.broadcast %c32_i32_140 : i32 to vector<8x32xi32>
    %551 = arith.select %549, %545, %550 : vector<8x32xi1>, vector<8x32xi32>
    %cst_141 = arith.constant dense<2147483647> : vector<8xi32>
    %552 = vector.multi_reduction <minsi>, %551, %cst_141 [1] : vector<8x32xi32> to vector<8xi32>
    %553 = vector.shape_cast %552 : vector<8xi32> to vector<8x1xi32>
    %554 = vector.broadcast %553 : vector<8x1xi32> to vector<8x32xi32>
    %555 = arith.cmpi eq, %545, %554 : vector<8x32xi32>
    %556 = arith.extui %555 : vector<8x32xi1> to vector<8x32xi32>
    %557 = arith.sitofp %556 : vector<8x32xi32> to vector<8x32xf32>
    %cst_142 = arith.constant dense<0xFF800000> : vector<32xf32>
    %558 = vector.multi_reduction <maximumf>, %557, %cst_142 [0] : vector<8x32xf32> to vector<32xf32>
    %559 = vector.shape_cast %558 : vector<32xf32> to vector<1x32xf32>
    %cst_143 = arith.constant dense<0.000000e+00> : vector<1x128xf32>
    %560 = tpu.matmul %559, %171, %cst_143 {dimension_numbers = #tpu.dot_dimension_numbers<[1], [0], [0], [1], [0, 0, 1, 1], [], []>} : vector<1x32xf32>, vector<32x128xf32>, vector<1x128xf32> -> vector<1x128xf32>
    %561 = arith.addf %560, %173 : vector<1x128xf32>
    %562 = vector.shape_cast %561 : vector<1x128xf32> to vector<1x128xf32>
    %563 = vector.broadcast %562 : vector<1x128xf32> to vector<8x128xf32>
    %c9_i32 = arith.constant 9 : i32
    return
  }
  func.func @transform_0(%arg0: i32) -> (i32, i32, i32) {
    %c0_i32 = arith.constant 0 : i32
    %c0_i32_0 = arith.constant 0 : i32
    %c0_i32_1 = arith.constant 0 : i32
    %c0_i32_2 = arith.constant 0 : i32
    return %c0_i32, %c0_i32_0, %c0_i32_1 : i32, i32, i32
  }
  func.func @transform_1(%arg0: i32) -> (i32, i32) {
    %c0_i32 = arith.constant 0 : i32
    %c0_i32_0 = arith.constant 0 : i32
    %c0_i32_1 = arith.constant 0 : i32
    return %c0_i32, %c0_i32_0 : i32, i32
  }
  func.func @transform_2(%arg0: i32) -> (i32, i32) {
    %c0_i32 = arith.constant 0 : i32
    %c0_i32_0 = arith.constant 0 : i32
    %c0_i32_1 = arith.constant 0 : i32
    return %c0_i32, %c0_i32_0 : i32, i32
  }
  func.func @transform_3(%arg0: i32) -> (i32, i32) {
    %c0_i32 = arith.constant 0 : i32
    %c0_i32_0 = arith.constant 0 : i32
    %c0_i32_1 = arith.constant 0 : i32
    return %c0_i32, %c0_i32_0 : i32, i32
  }
  func.func @transform_4(%arg0: i32) -> (i32, i32) {
    %c0_i32 = arith.constant 0 : i32
    %c0_i32_0 = arith.constant 0 : i32
    %c0_i32_1 = arith.constant 0 : i32
    return %c0_i32, %c0_i32_0 : i32, i32
  }
  func.func @transform_5(%arg0: i32) -> (i32, i32) {
    %c0_i32 = arith.constant 0 : i32
    %c0_i32_0 = arith.constant 0 : i32
    %c0_i32_1 = arith.constant 0 : i32
    return %c0_i32, %c0_i32_0 : i32, i32
  }
  func.func @transform_6(%arg0: i32) -> (i32, i32) {
    %c0_i32 = arith.constant 0 : i32
    %c0_i32_0 = arith.constant 0 : i32
    %c0_i32_1 = arith.constant 0 : i32
    return %c0_i32, %c0_i32_0 : i32, i32
  }
  func.func @transform_7(%arg0: i32) -> (i32, i32) {
    %c0_i32 = arith.constant 0 : i32
    %c0_i32_0 = arith.constant 0 : i32
    %c0_i32_1 = arith.constant 0 : i32
    return %c0_i32, %c0_i32_0 : i32, i32
  }
  func.func @transform_8(%arg0: i32) -> (i32, i32, i32) {
    %c0_i32 = arith.constant 0 : i32
    %c0_i32_0 = arith.constant 0 : i32
    %c0_i32_1 = arith.constant 0 : i32
    %c0_i32_2 = arith.constant 0 : i32
    return %c0_i32, %c0_i32_0, %c0_i32_1 : i32, i32, i32
  }
}

</mosaic_0001>

<bundles_post_ra>
// kernel: seq2seq_forward.1
= control target key start
LH: loop header
LB: loop body
LE: loop exit
PB: predicated region body
PF: predicated region fallthrough
CT: control target
= control target key end

     0   :  { %v4054_v0 = vmov 0.0   ;;  %vm4055_vm0 = vmmov 0   ;;  %s4056_s14 = smov 32   ;;  %s4057_s15 = smov 64   ;;  %vm34_vm1 = vcmask 261120   ;;  %s4868_s1 = inlined_call_operand.vmem [shape: f32[32,128], index: 1, kind: input, shape index: {}]   ;;  %s4869_s0 = inlined_call_operand.vmem [shape: f32[8,8,128], index: 0, kind: input, shape index: {}]   ;;  %s4870_s4 = inlined_call_operand.vmem [shape: f32[32,128], index: 4, kind: input, shape index: {}]   ;;  %s4871_s2 = inlined_call_operand.vmem [shape: f32[8,128], index: 2, kind: input, shape index: {}]   ;;  %s4872_s6 = inlined_call_operand.vmem [shape: f32[32,32], index: 6, kind: input, shape index: {}]   ;;  %s4873_s7 = inlined_call_operand.vmem [shape: f32[1,32], index: 7, kind: input, shape index: {}]   ;;  %s4874_s8 = inlined_call_operand.vmem [shape: f32[9,8,32], index: 8, kind: output, shape index: {}]   ;;  %s4875_s3 = inlined_call_operand.vmem [shape: f32[32,128], index: 3, kind: input, shape index: {}]   ;;  %s4876_s5 = inlined_call_operand.vmem [shape: f32[1,128], index: 5, kind: input, shape index: {}]  }
   0x1   :  { %3526 = vmatprep.subr.mxu0 %v4054_v0  ;;  %v4107_v1 = vld [vmem:[%s4868_s1 + $0x18] sm:$0xff]  ;;  %v4112_v2 = vld [vmem:[%s4868_s1 + $0x10] sm:$0xff]  ;;  %3534 = vmatprep.mubr.msk.f32.mxu0 %vm4055_vm0, %v4054_v0  ;;  %v4122_v3 = vld [vmem:[%s4868_s1 + $0x8] sm:$0xff] }
   0x2   :  { %3527 = vmatpush3.msra.mxu0 %v4107_v1  ;;  %3537 = vmatprep.subr.mxu1 %v4054_v0  ;;  %v4131_v4 = vld [vmem:[%s4868_s1] sm:$0xff]  ;;  %v3283_v23 = vld [vmem:[%s4869_s0 + $0x8] sm:$0xff]  ;;  %v3286_v41 = vld [vmem:[%s4869_s0 + $0x10] sm:$0xff] }
   0x3   :  { %3528 = vmatprep.subr.mxu0 %v4054_v0  ;;  %3538 = vmatpush3.msra.mxu1 %v4107_v1  ;;  %v33_v5 = vld [vmem:[%s4869_s0] sm:$0xff]  ;;  %v3289_v59 = vld [vmem:[%s4869_s0 + $0x18] sm:$0xff] }
   0x4   :  { %3529 = vmatpush3.msra.mxu0 %v4112_v2  ;;  %3539 = vmatprep.subr.mxu1 %v4054_v0 }
   0x5   :  { %3530 = vmatprep.subr.mxu0 %v4054_v0  ;;  %3540 = vmatpush3.msra.mxu1 %v4112_v2 }
   0x6   :  { %3531 = vmatpush3.msra.mxu0 %v4122_v3  ;;  %3541 = vmatprep.subr.mxu1 %v4054_v0 }
   0x7   :  { %3532 = vmatprep.subr.mxu0 %v4054_v0  ;;  %3542 = vmatpush3.msra.mxu1 %v4122_v3 }
   0x8   :  { %3533 = vmatpush3.msra.mxu0 %v4131_v4  ;;  %3543 = vmatprep.subr.mxu1 %v4054_v0 }
   0x9   :  { %3535 = vmatmul.mubr.f32.vlgmr.msra.gmra.mxu0 %v4054_v0  ;;  %3544 = vmatpush3.msra.mxu1 %v4131_v4 }
   0xa   :  { %3545 = vmatprep.mubr.msk.f32.mxu1 %vm4055_vm0, %v4054_v0  ;;  %3548 = vmatprep.subr.mxu0 %v4054_v0 }
   0xb   :  { %3549 = vmatpush3.msra.mxu0 %v4107_v1  ;;  %3556 = vmatprep.mubr.msk.f32.mxu0 %vm4055_vm0, %v4054_v0 }
   0xc   :  { %3550 = vmatprep.subr.mxu0 %v4054_v0  ;;  %3559 = vmatprep.subr.mxu1 %v4054_v0 }
   0xd   :  { %3551 = vmatpush3.msra.mxu0 %v4112_v2 }
   0xe   :  { %3552 = vmatprep.subr.mxu0 %v4054_v0 }
   0xf   :  { %3553 = vmatpush3.msra.mxu0 %v4122_v3 }
  0x10   :  { %3554 = vmatprep.subr.mxu0 %v4054_v0 }
  0x11   :  { %3555 = vmatpush3.msra.mxu0 %v4131_v4 }
  0x12   :  { %3570 = vmatprep.subr.mxu0 %v4054_v0 }
  0xc9   :  { %v104_v6 = vpop.f32.mrf.mxu0 }
  0xca   :  { %v108_v7 = vadd.f32 %v104_v6, %v33_v5 }
  0xcb   :  { %v3536_v8 = vpop.f32.mrf.mxu0 }
  0xcc   :  { %3904 = vtanh.f32 %v108_v7  ;;  %v3282_v10 = vmul.f32 -1.442695, %v108_v7 }
  0xce   :  { %3906 = vpow2.f32 %v3282_v10 }
  0xd9   :  { %v3905_v9 = vpop.eup %3904 }
  0xda   :  { %118 = vrot.lane.b32.xlu0 %v3905_v9, %s4056_s14 }
  0xdb   :  { %v3907_v11 = vpop.eup %3906 }
  0xdc   :  { %v112_v12 = vadd.f32 1.0, %v3907_v11 }
  0xde   :  { %3908 = vrcp.f32 %v112_v12 }
  0xeb   :  { %v3909_v13 = vpop.eup %3908 }
  0xec   :  { %v116_v16 = vmul.f32 0.0, %v3909_v13 }
 0x14c   :  { %v119_v14 = vpop.permute.xlu0 %118 }
 0x14d   :  { %v121_v15 = vmul.f32 %v3909_v13, %v119_v14 }
 0x14f   :  { %123 = vrot.lane.b32.xlu0 %v121_v15, %s4056_s14 }
 0x1c1   :  { %v124_v17 = vpop.permute.xlu0 %123 }
 0x1c2   :  { %v126_v18 = vadd.f32 %v124_v17, %v116_v16 }
 0x1c4   :  { %3910 = vtanh.f32 %v126_v18 }
 0x1d1   :  { %v3911_v19 = vpop.eup %3910 }
 0x1d2   :  { %129 = vrot.lane.b32.xlu1 %v3911_v19, %s4056_s14 }
 0x244   :  { %v130_v20 = vpop.permute.xlu1 %129 }
 0x245   :  { %v132_v21 = vmul.f32 %v3909_v13, %v130_v20 }
 0x247   :  { %136 = vrot.lane.b32.xlu1 %v132_v21, %s4057_s15 }
 0x2b9   :  { %v137_v22 = vpop.permute.xlu1 %136 }
 0x2ba   :  { %3546 = vmatmul.mubr.msk.f32.vlgmr.msra.gmra.mxu1 %vm34_vm1, %v137_v22 }
 0x2bb   :  { %3560 = vmatpush3.msra.mxu1 %v4107_v1  ;;  %3567 = vmatprep.mubr.msk.f32.mxu1 %vm4055_vm0, %v4054_v0 }
 0x2bc   :  { %3561 = vmatprep.subr.mxu1 %v4054_v0 }
 0x2bd   :  { %3562 = vmatpush3.msra.mxu1 %v4112_v2 }
 0x2be   :  { %3563 = vmatprep.subr.mxu1 %v4054_v0 }
 0x2bf   :  { %3564 = vmatpush3.msra.mxu1 %v4122_v3 }
 0x2c0   :  { %3565 = vmatprep.subr.mxu1 %v4054_v0 }
 0x2c1   :  { %3566 = vmatpush3.msra.mxu1 %v4131_v4 }
 0x2c2   :  { %3581 = vmatprep.subr.mxu1 %v4054_v0 }
 0x37a   :  { %v206_v24 = vpop.f32.mrf.mxu1 }
 0x37b   :  { %v210_v25 = vadd.f32 %v3283_v23, %v206_v24 }
 0x37c   :  { %v3547_v26 = vpop.f32.mrf.mxu1 }
 0x37d   :  { %3912 = vtanh.f32 %v210_v25  ;;  %v3285_v28 = vmul.f32 -1.442695, %v210_v25 }
 0x37f   :  { %3914 = vpow2.f32 %v3285_v28 }
 0x38a   :  { %v3913_v27 = vpop.eup %3912 }
 0x38b   :  { %220 = vrot.lane.b32.xlu0 %v3913_v27, %s4056_s14 }
 0x38c   :  { %v3915_v29 = vpop.eup %3914 }
 0x38d   :  { %v214_v30 = vadd.f32 1.0, %v3915_v29 }
 0x38f   :  { %3916 = vrcp.f32 %v214_v30 }
 0x39c   :  { %v3917_v31 = vpop.eup %3916 }
 0x39d   :  { %v218_v34 = vmul.f32 %v3917_v31, %v126_v18  ;;  %v3292_v18 = vld [vmem:[%s4869_s0 + $0x20] sm:$0xff] }
 0x3fd   :  { %v221_v32 = vpop.permute.xlu0 %220 }
 0x3fe   :  { %v223_v33 = vmul.f32 %v3917_v31, %v221_v32 }
 0x400   :  { %225 = vrot.lane.b32.xlu1 %v223_v33, %s4056_s14 }
 0x472   :  { %v226_v35 = vpop.permute.xlu1 %225 }
 0x473   :  { %v228_v36 = vadd.f32 %v226_v35, %v218_v34 }
 0x475   :  { %3918 = vtanh.f32 %v228_v36 }
 0x482   :  { %v3919_v37 = vpop.eup %3918 }
 0x483   :  { %231 = vrot.lane.b32.xlu0 %v3919_v37, %s4056_s14 }
 0x4f5   :  { %v232_v38 = vpop.permute.xlu0 %231 }
 0x4f6   :  { %v234_v39 = vmul.f32 %v3917_v31, %v232_v38 }
 0x4f8   :  { %238 = vrot.lane.b32.xlu1 %v234_v39, %s4057_s15 }
 0x56a   :  { %v239_v40 = vpop.permute.xlu1 %238 }
 0x56b   :  { %3557 = vmatmul.mubr.msk.f32.vlgmr.msra.gmra.mxu0 %vm34_vm1, %v239_v40 }
 0x56c   :  { %3571 = vmatpush3.msra.mxu0 %v4107_v1  ;;  %3578 = vmatprep.mubr.msk.f32.mxu0 %vm4055_vm0, %v4054_v0 }
 0x56d   :  { %3572 = vmatprep.subr.mxu0 %v4054_v0 }
 0x56e   :  { %3573 = vmatpush3.msra.mxu0 %v4112_v2 }
 0x56f   :  { %3574 = vmatprep.subr.mxu0 %v4054_v0 }
 0x570   :  { %3575 = vmatpush3.msra.mxu0 %v4122_v3 }
 0x571   :  { %3576 = vmatprep.subr.mxu0 %v4054_v0 }
 0x572   :  { %3577 = vmatpush3.msra.mxu0 %v4131_v4 }
 0x573   :  { %3592 = vmatprep.subr.mxu0 %v4054_v0 }
 0x62b   :  { %v308_v42 = vpop.f32.mrf.mxu0 }
 0x62c   :  { %v312_v43 = vadd.f32 %v3286_v41, %v308_v42 }
 0x62d   :  { %v3558_v44 = vpop.f32.mrf.mxu0 }
 0x62e   :  { %3920 = vtanh.f32 %v312_v43  ;;  %v3288_v46 = vmul.f32 -1.442695, %v312_v43 }
 0x630   :  { %3922 = vpow2.f32 %v3288_v46 }
 0x63b   :  { %v3921_v45 = vpop.eup %3920 }
 0x63c   :  { %322 = vrot.lane.b32.xlu0 %v3921_v45, %s4056_s14 }
 0x63d   :  { %v3923_v47 = vpop.eup %3922 }
 0x63e   :  { %v316_v48 = vadd.f32 1.0, %v3923_v47 }
 0x640   :  { %3924 = vrcp.f32 %v316_v48 }
 0x64d   :  { %v3925_v49 = vpop.eup %3924 }
 0x64e   :  { %v320_v52 = vmul.f32 %v3925_v49, %v228_v36 }
 0x6ae   :  { %v323_v50 = vpop.permute.xlu0 %322 }
 0x6af   :  { %v325_v51 = vmul.f32 %v3925_v49, %v323_v50  ;;  %v3298_v50 = vld [vmem:[%s4869_s0 + $0x30] sm:$0xff] }
 0x6b1   :  { %327 = vrot.lane.b32.xlu1 %v325_v51, %s4056_s14 }
 0x723   :  { %v328_v53 = vpop.permute.xlu1 %327 }
 0x724   :  { %v330_v54 = vadd.f32 %v328_v53, %v320_v52 }
 0x726   :  { %3926 = vtanh.f32 %v330_v54 }
 0x733   :  { %v3927_v55 = vpop.eup %3926 }
 0x734   :  { %333 = vrot.lane.b32.xlu0 %v3927_v55, %s4056_s14 }
 0x7a6   :  { %v334_v56 = vpop.permute.xlu0 %333 }
 0x7a7   :  { %v336_v57 = vmul.f32 %v3925_v49, %v334_v56 }
 0x7a9   :  { %340 = vrot.lane.b32.xlu1 %v336_v57, %s4057_s15 }
 0x81b   :  { %v341_v58 = vpop.permute.xlu1 %340 }
 0x81c   :  { %3568 = vmatmul.mubr.msk.f32.vlgmr.msra.gmra.mxu1 %vm34_vm1, %v341_v58 }
 0x81d   :  { %3582 = vmatpush3.msra.mxu1 %v4107_v1  ;;  %3589 = vmatprep.mubr.msk.f32.mxu1 %vm4055_vm0, %v4054_v0 }
 0x81e   :  { %3583 = vmatprep.subr.mxu1 %v4054_v0 }
 0x81f   :  { %3584 = vmatpush3.msra.mxu1 %v4112_v2 }
 0x820   :  { %3585 = vmatprep.subr.mxu1 %v4054_v0 }
 0x821   :  { %3586 = vmatpush3.msra.mxu1 %v4122_v3 }
 0x822   :  { %3587 = vmatprep.subr.mxu1 %v4054_v0 }
 0x823   :  { %3588 = vmatpush3.msra.mxu1 %v4131_v4 }
 0x824   :  { %3603 = vmatprep.subr.mxu1 %v4054_v0 }
 0x8dc   :  { %v410_v60 = vpop.f32.mrf.mxu1 }
 0x8dd   :  { %v414_v61 = vadd.f32 %v3289_v59, %v410_v60 }
 0x8de   :  { %v3569_v62 = vpop.f32.mrf.mxu1 }
 0x8df   :  { %3928 = vtanh.f32 %v414_v61  ;;  %v3291_v5 = vmul.f32 -1.442695, %v414_v61 }
 0x8e1   :  { %3930 = vpow2.f32 %v3291_v5 }
 0x8ec   :  { %v3929_v63 = vpop.eup %3928 }
 0x8ed   :  { %424 = vrot.lane.b32.xlu0 %v3929_v63, %s4056_s14 }
 0x8ee   :  { %v3931_v6 = vpop.eup %3930 }
 0x8ef   :  { %v418_v7 = vadd.f32 1.0, %v3931_v6 }
 0x8f1   :  { %3932 = vrcp.f32 %v418_v7 }
 0x8fe   :  { %v3933_v8 = vpop.eup %3932 }
 0x8ff   :  { %v422_v11 = vmul.f32 %v3933_v8, %v330_v54 }
 0x95f   :  { %v425_v9 = vpop.permute.xlu0 %424 }
 0x960   :  { %v427_v10 = vmul.f32 %v3933_v8, %v425_v9  ;;  %v3301_v9 = vld [vmem:[%s4869_s0 + $0x38] sm:$0xff] }
 0x962   :  { %429 = vrot.lane.b32.xlu1 %v427_v10, %s4056_s14 }
 0x9d4   :  { %v430_v12 = vpop.permute.xlu1 %429 }
 0x9d5   :  { %v432_v13 = vadd.f32 %v430_v12, %v422_v11 }
 0x9d7   :  { %3934 = vtanh.f32 %v432_v13 }
 0x9e4   :  { %v3935_v14 = vpop.eup %3934 }
 0x9e5   :  { %435 = vrot.lane.b32.xlu0 %v3935_v14, %s4056_s14 }
 0xa57   :  { %v436_v15 = vpop.permute.xlu0 %435 }
 0xa58   :  { %v438_v16 = vmul.f32 %v3933_v8, %v436_v15 }
 0xa5a   :  { %442 = vrot.lane.b32.xlu1 %v438_v16, %s4057_s15 }
 0xacc   :  { %v443_v17 = vpop.permute.xlu1 %442 }
 0xacd   :  { %3579 = vmatmul.mubr.msk.f32.vlgmr.msra.gmra.mxu0 %vm34_vm1, %v443_v17 }
 0xace   :  { %3593 = vmatpush3.msra.mxu0 %v4107_v1  ;;  %3600 = vmatprep.mubr.msk.f32.mxu0 %vm4055_vm0, %v4054_v0 }
 0xacf   :  { %3594 = vmatprep.subr.mxu0 %v4054_v0 }
 0xad0   :  { %3595 = vmatpush3.msra.mxu0 %v4112_v2 }
 0xad1   :  { %3596 = vmatprep.subr.mxu0 %v4054_v0 }
 0xad2   :  { %3597 = vmatpush3.msra.mxu0 %v4122_v3 }
 0xad3   :  { %3598 = vmatprep.subr.mxu0 %v4054_v0 }
 0xad4   :  { %3599 = vmatpush3.msra.mxu0 %v4131_v4 }
 0xad5   :  { %3614 = vmatprep.subr.mxu0 %v4054_v0 }
 0xb8d   :  { %v512_v19 = vpop.f32.mrf.mxu0 }
 0xb8e   :  { %v516_v20 = vadd.f32 %v3292_v18, %v512_v19 }
 0xb8f   :  { %v3580_v21 = vpop.f32.mrf.mxu0 }
 0xb90   :  { %3936 = vtanh.f32 %v516_v20  ;;  %v3294_v23 = vmul.f32 -1.442695, %v516_v20 }
 0xb92   :  { %3938 = vpow2.f32 %v3294_v23  ;;  %v4274_v23 = vld [vmem:[%s4870_s4 + $0x18] sm:$0xff] }
 0xb9d   :  { %v3937_v22 = vpop.eup %3936 }
 0xb9e   :  { %526 = vrot.lane.b32.xlu0 %v3937_v22, %s4056_s14 }
 0xb9f   :  { %v3939_v24 = vpop.eup %3938 }
 0xba0   :  { %v520_v25 = vadd.f32 1.0, %v3939_v24  ;;  %v4279_v24 = vld [vmem:[%s4870_s4 + $0x10] sm:$0xff] }
 0xba2   :  { %3940 = vrcp.f32 %v520_v25  ;;  %v4286_v25 = vld [vmem:[%s4870_s4 + $0x8] sm:$0xff] }
 0xbaf   :  { %v3941_v26 = vpop.eup %3940 }
 0xbb0   :  { %v524_v29 = vmul.f32 %v3941_v26, %v432_v13 }
 0xc10   :  { %v527_v27 = vpop.permute.xlu0 %526 }
 0xc11   :  { %v529_v28 = vmul.f32 %v3941_v26, %v527_v27 }
 0xc13   :  { %531 = vrot.lane.b32.xlu1 %v529_v28, %s4056_s14 }
 0xc85   :  { %v532_v30 = vpop.permute.xlu1 %531 }
 0xc86   :  { %v534_v31 = vadd.f32 %v532_v30, %v524_v29 }
 0xc88   :  { %3942 = vtanh.f32 %v534_v31 }
 0xc95   :  { %v3943_v32 = vpop.eup %3942 }
 0xc96   :  { %537 = vrot.lane.b32.xlu0 %v3943_v32, %s4056_s14 }
 0xd08   :  { %v538_v33 = vpop.permute.xlu0 %537 }
 0xd09   :  { %v540_v34 = vmul.f32 %v3941_v26, %v538_v33  ;;  %v4293_v26 = vld [vmem:[%s4870_s4] sm:$0xff] }
 0xd0b   :  { %544 = vrot.lane.b32.xlu1 %v540_v34, %s4057_s15 }
 0xd7d   :  { %v545_v35 = vpop.permute.xlu1 %544 }
 0xd7e   :  { %3590 = vmatmul.mubr.msk.f32.vlgmr.msra.gmra.mxu1 %vm34_vm1, %v545_v35 }
 0xd7f   :  { %3604 = vmatpush3.msra.mxu1 %v4107_v1  ;;  %3611 = vmatprep.mubr.msk.f32.mxu1 %vm4055_vm0, %v4054_v0  ;;  %v3295_v1 = vld [vmem:[%s4869_s0 + $0x28] sm:$0xff] }
 0xd80   :  { %3605 = vmatprep.subr.mxu1 %v4054_v0 }
 0xd81   :  { %3606 = vmatpush3.msra.mxu1 %v4112_v2 }
 0xd82   :  { %3607 = vmatprep.subr.mxu1 %v4054_v0 }
 0xd83   :  { %3608 = vmatpush3.msra.mxu1 %v4122_v3 }
 0xd84   :  { %3609 = vmatprep.subr.mxu1 %v4054_v0 }
 0xd85   :  { %3610 = vmatpush3.msra.mxu1 %v4131_v4 }
 0xd86   :  { %3625 = vmatprep.subr.mxu1 %v4054_v0 }
 0xe3e   :  { %v614_v36 = vpop.f32.mrf.mxu1 }
 0xe3f   :  { %v618_v37 = vadd.f32 %v3295_v1, %v614_v36 }
 0xe40   :  { %v3591_v38 = vpop.f32.mrf.mxu1 }
 0xe41   :  { %3944 = vtanh.f32 %v618_v37  ;;  %v3297_v2 = vmul.f32 -1.442695, %v618_v37 }
 0xe43   :  { %3946 = vpow2.f32 %v3297_v2 }
 0xe4e   :  { %v3945_v39 = vpop.eup %3944 }
 0xe4f   :  { %628 = vrot.lane.b32.xlu0 %v3945_v39, %s4056_s14 }
 0xe50   :  { %v3947_v3 = vpop.eup %3946 }
 0xe51   :  { %v622_v40 = vadd.f32 1.0, %v3947_v3 }
 0xe53   :  { %3948 = vrcp.f32 %v622_v40 }
 0xe60   :  { %v3949_v41 = vpop.eup %3948 }
 0xe61   :  { %v626_v43 = vmul.f32 %v3949_v41, %v534_v31  ;;  %v861_v31 = vld [vmem:[%s4871_s2] sm:$0xff] }
 0xec1   :  { %v629_v4 = vpop.permute.xlu0 %628 }
 0xec2   :  { %v631_v42 = vmul.f32 %v3949_v41, %v629_v4  ;;  %v4315_v4 = vld [vmem:[%s4872_s6 + $0x18] sm:$0xff] }
 0xec4   :  { %633 = vrot.lane.b32.xlu1 %v631_v42, %s4056_s14  ;;  %v4320_v42 = vld [vmem:[%s4872_s6 + $0x10] sm:$0xff] }
 0xf36   :  { %v634_v44 = vpop.permute.xlu1 %633 }
 0xf37   :  { %v636_v45 = vadd.f32 %v634_v44, %v626_v43  ;;  %v4327_v43 = vld [vmem:[%s4872_s6 + $0x8] sm:$0xff]  ;;  %v4334_v44 = vld [vmem:[%s4872_s6] sm:$0xff] }
 0xf39   :  { %3950 = vtanh.f32 %v636_v45 }
 0xf46   :  { %v3951_v46 = vpop.eup %3950 }
 0xf47   :  { %639 = vrot.lane.b32.xlu0 %v3951_v46, %s4056_s14 }
 0xfb9   :  { %v640_v47 = vpop.permute.xlu0 %639 }
 0xfba   :  { %v642_v48 = vmul.f32 %v3949_v41, %v640_v47 }
 0xfbc   :  { %646 = vrot.lane.b32.xlu1 %v642_v48, %s4057_s15 }
0x102e   :  { %v647_v49 = vpop.permute.xlu1 %646 }
0x102f   :  { %3601 = vmatmul.mubr.msk.f32.vlgmr.msra.gmra.mxu0 %vm34_vm1, %v647_v49  ;;  %v4359_v49 = vld [vmem:[%s4873_s7] ss:$0 sm:$0xff] }
0x1030   :  { %3622 = vmatprep.mubr.msk.f32.mxu0 %vm4055_vm0, %v4054_v0  ;;  %3615 = vmatpush3.msra.mxu0 %v4274_v23 }
0x1031   :  { %3616 = vmatprep.subr.mxu0 %v4054_v0 }
0x1032   :  { %3617 = vmatpush3.msra.mxu0 %v4279_v24 }
0x1033   :  { %3618 = vmatprep.subr.mxu0 %v4054_v0 }
0x1034   :  { %3619 = vmatpush3.msra.mxu0 %v4286_v25 }
0x1035   :  { %3620 = vmatprep.subr.mxu0 %v4054_v0 }
0x1036   :  { %3621 = vmatpush3.msra.mxu0 %v4293_v26 }
0x1037   :  { %3636 = vmatprep.subr.mxu0 %v4054_v0 }
0x10ef   :  { %v716_v51 = vpop.f32.mrf.mxu0 }
0x10f0   :  { %v720_v52 = vadd.f32 %v3298_v50, %v716_v51 }
0x10f1   :  { %v3602_v53 = vpop.f32.mrf.mxu0 }
0x10f2   :  { %3952 = vtanh.f32 %v720_v52  ;;  %v3300_v55 = vmul.f32 -1.442695, %v720_v52 }
0x10f4   :  { %3954 = vpow2.f32 %v3300_v55 }
0x10ff   :  { %v3953_v54 = vpop.eup %3952 }
0x1100   :  { %730 = vrot.lane.b32.xlu0 %v3953_v54, %s4056_s14 }
0x1101   :  { %v3955_v56 = vpop.eup %3954 }
0x1102   :  { %v724_v57 = vadd.f32 1.0, %v3955_v56  ;;  %v1044_v56 = vlaneseq }
0x1104   :  { %3956 = vrcp.f32 %v724_v57  ;;  %v4369_v57 = vand.u32 127, %v1044_v56 }
0x1111   :  { %v3957_v58 = vpop.eup %3956 }
0x1112   :  { %v728_v61 = vmul.f32 %v3957_v58, %v636_v45 }
0x1172   :  { %v731_v59 = vpop.permute.xlu0 %730 }
0x1173   :  { %v733_v60 = vmul.f32 %v3957_v58, %v731_v59 }
0x1175   :  { %735 = vrot.lane.b32.xlu1 %v733_v60, %s4056_s14 }
0x11e7   :  { %v736_v62 = vpop.permute.xlu1 %735 }
0x11e8   :  { %v738_v63 = vadd.f32 %v736_v62, %v728_v61 }
0x11ea   :  { %3958 = vtanh.f32 %v738_v63 }
0x11f7   :  { %v3959_v5 = vpop.eup %3958 }
0x11f8   :  { %741 = vrot.lane.b32.xlu0 %v3959_v5, %s4056_s14 }
0x126a   :  { %v742_v6 = vpop.permute.xlu0 %741 }
0x126b   :  { %v744_v7 = vmul.f32 %v3957_v58, %v742_v6 }
0x126d   :  { %748 = vrot.lane.b32.xlu1 %v744_v7, %s4057_s15 }
0x12df   :  { %v749_v8 = vpop.permute.xlu1 %748 }
0x12e0   :  { %3612 = vmatmul.mubr.msk.f32.vlgmr.msra.gmra.mxu1 %vm34_vm1, %v749_v8  ;;  %v4376_v8 = vld [vmem:[%s4875_s3 + $0x18] sm:$0xff] }
0x12e1   :  { %3633 = vmatprep.mubr.msk.f32.mxu1 %vm4055_vm0, %v4054_v0  ;;  %3626 = vmatpush3.msra.mxu1 %v4315_v4 }
0x12e2   :  { %3627 = vmatprep.subr.mxu1 %v4054_v0 }
0x12e3   :  { %3628 = vmatpush3.msra.mxu1 %v4320_v42 }
0x12e4   :  { %3629 = vmatprep.subr.mxu1 %v4054_v0 }
0x12e5   :  { %3630 = vmatpush3.msra.mxu1 %v4327_v43 }
0x12e6   :  { %3631 = vmatprep.subr.mxu1 %v4054_v0 }
0x12e7   :  { %3632 = vmatpush3.msra.mxu1 %v4334_v44 }
0x12e8   :  { %3647 = vmatprep.subr.mxu1 %v4054_v0 }
0x13a0   :  { %v818_v10 = vpop.f32.mrf.mxu1 }
0x13a1   :  { %v822_v11 = vadd.f32 %v3301_v9, %v818_v10  ;;  %v4384_v9 = vld [vmem:[%s4875_s3 + $0x10] sm:$0xff]  ;;  %v4393_v10 = vld [vmem:[%s4875_s3 + $0x8] sm:$0xff] }
0x13a2   :  { %v3613_v12 = vpop.f32.mrf.mxu1 }
0x13a3   :  { %3960 = vtanh.f32 %v822_v11  ;;  %v3303_v14 = vmul.f32 -1.442695, %v822_v11  ;;  %v4400_v11 = vld [vmem:[%s4875_s3] sm:$0xff] }
0x13a5   :  { %3962 = vpow2.f32 %v3303_v14 }
0x13b0   :  { %v3961_v13 = vpop.eup %3960 }
0x13b1   :  { %832 = vrot.lane.b32.xlu0 %v3961_v13, %s4056_s14 }
0x13b2   :  { %v3963_v15 = vpop.eup %3962 }
0x13b3   :  { %v826_v16 = vadd.f32 1.0, %v3963_v15 }
0x13b5   :  { %3964 = vrcp.f32 %v826_v16 }
0x13c2   :  { %v3965_v17 = vpop.eup %3964 }
0x13c3   :  { %v830_v20 = vmul.f32 %v3965_v17, %v738_v63 }
0x1423   :  { %v833_v18 = vpop.permute.xlu0 %832 }
0x1424   :  { %v835_v19 = vmul.f32 %v3965_v17, %v833_v18 }
0x1426   :  { %837 = vrot.lane.b32.xlu1 %v835_v19, %s4056_s14 }
0x1498   :  { %v838_v21 = vpop.permute.xlu1 %837 }
0x1499   :  { %v840_v22 = vadd.f32 %v838_v21, %v830_v20 }
0x149b   :  { %3966 = vtanh.f32 %v840_v22 }
0x14a8   :  { %v3967_v27 = vpop.eup %3966 }
0x14a9   :  { %843 = vrot.lane.b32.xlu0 %v3967_v27, %s4056_s14 }
0x151b   :  { %v844_v28 = vpop.permute.xlu0 %843 }
0x151c   :  { %v846_v29 = vmul.f32 %v3965_v17, %v844_v28 }
0x151e   :  { %863 = vrot.lane.b32.xlu1 %v846_v29, %s4057_s15  ;;  %v1150_v29 = vshrl.u32 %v1044_v56, 7 }
0x1590   :  { %v864_v30 = vpop.permute.xlu1 %863 }
0x1591   :  { %3623 = vmatmul.mubr.msk.f32.vlgmr.msra.gmra.mxu0 %vm34_vm1, %v864_v30  ;;  %v4426_v30 = vld [vmem:[%s4876_s5] sm:$0x1] }
0x1592   :  { %3644 = vmatprep.mubr.msk.f32.mxu0 %vm4055_vm0, %v4054_v0  ;;  %3637 = vmatpush3.msra.mxu0 %v4376_v8 }
0x1593   :  { %3638 = vmatprep.subr.mxu0 %v4054_v0 }
0x1594   :  { %3639 = vmatpush3.msra.mxu0 %v4384_v9 }
0x1595   :  { %3640 = vmatprep.subr.mxu0 %v4054_v0 }
0x1596   :  { %3641 = vmatpush3.msra.mxu0 %v4393_v10 }
0x1597   :  { %3642 = vmatprep.subr.mxu0 %v4054_v0 }
0x1598   :  { %3643 = vmatpush3.msra.mxu0 %v4400_v11 }
0x1599   :  { %3658 = vmatprep.subr.mxu0 %v4054_v0 }
0x1651   :  { %v933_v32 = vpop.f32.mrf.mxu0 }
0x1652   :  { %v937_v33 = vadd.f32 %v933_v32, %v861_v31  ;;  %v4428_v31 = vsub.s32 0, %v1150_v29 }
0x1653   :  { %v3624_v34 = vpop.f32.mrf.mxu0 }
0x1654   :  { %3968 = vtanh.f32 %v937_v33  ;;  %v3305_v1 = vmul.f32 -1.442695, %v937_v33 }
0x1656   :  { %3970 = vpow2.f32 %v3305_v1 }
0x1661   :  { %v3969_v35 = vpop.eup %3968 }
0x1662   :  { %947 = vrot.lane.b32.xlu0 %v3969_v35, %s4056_s14 }
0x1663   :  { %v3971_v36 = vpop.eup %3970 }
0x1664   :  { %v941_v37 = vadd.f32 1.0, %v3971_v36 }
0x1666   :  { %3972 = vrcp.f32 %v941_v37 }
0x1673   :  { %v3973_v38 = vpop.eup %3972 }
0x1674   :  { %v945_v3 = vmul.f32 %v3973_v38, %v840_v22 }
0x16d4   :  { %v948_v39 = vpop.permute.xlu0 %947 }
0x16d5   :  { %v950_v2 = vmul.f32 %v3973_v38, %v948_v39 }
0x16d7   :  { %952 = vrot.lane.b32.xlu1 %v950_v2, %s4056_s14 }
0x1749   :  { %v953_v40 = vpop.permute.xlu1 %952 }
0x174a   :  { %v4309_v41 = vadd.f32 %v953_v40, %v945_v3 }
0x174c   :  { %3974 = vtanh.f32 %v4309_v41 }
0x1759   :  { %v3975_v45 = vpop.eup %3974 }
0x175a   :  { %958 = vrot.lane.b32.xlu0 %v3975_v45, %s4056_s14 }
0x17cc   :  { %v959_v46 = vpop.permute.xlu0 %958 }
0x17cd   :  { %v961_v47 = vmul.f32 %v3973_v38, %v959_v46 }
0x17cf   :  { %969 = vrot.lane.b32.xlu1 %v961_v47, %s4057_s15 }
0x1841   :  { %v970_v48 = vpop.permute.xlu1 %969 }
0x1842   :  { %3634 = vmatmul.mubr.msk.f32.vlgmr.msra.gmra.mxu1 %vm34_vm1, %v970_v48 }
0x1843   :  { %3648 = vmatpush3.msra.mxu1 %v4274_v23  ;;  %3655 = vmatprep.mubr.msk.f32.mxu1 %vm4055_vm0, %v4054_v0 }
0x1844   :  { %3649 = vmatprep.subr.mxu1 %v4054_v0 }
0x1845   :  { %3650 = vmatpush3.msra.mxu1 %v4279_v24 }
0x1846   :  { %3651 = vmatprep.subr.mxu1 %v4054_v0 }
0x1847   :  { %3652 = vmatpush3.msra.mxu1 %v4286_v25 }
0x1848   :  { %3653 = vmatprep.subr.mxu1 %v4054_v0 }
0x1849   :  { %3654 = vmatpush3.msra.mxu1 %v4293_v26 }
0x184a   :  { %3656 = vmatmul.mubr.msk.f32.vlgmr.msra.gmra.mxu1 %vm34_vm1, %v970_v48  ;;  %3669 = vmatprep.subr.mxu1 %v4054_v0 }
0x184b   :  { %3677 = vmatprep.mubr.msk.f32.mxu1 %vm4055_vm0, %v4054_v0  ;;  %3670 = vmatpush3.msra.mxu1 %v4376_v8 }
0x184c   :  { %3671 = vmatprep.subr.mxu1 %v4054_v0 }
0x184d   :  { %3672 = vmatpush3.msra.mxu1 %v4384_v9 }
0x184e   :  { %3673 = vmatprep.subr.mxu1 %v4054_v0 }
0x184f   :  { %3674 = vmatpush3.msra.mxu1 %v4393_v10 }
0x1850   :  { %3675 = vmatprep.subr.mxu1 %v4054_v0 }
0x1851   :  { %3676 = vmatpush3.msra.mxu1 %v4400_v11 }
0x1852   :  { %3691 = vmatprep.subr.mxu1 %v4054_v0 }
0x1902   :  { %v1039_v50 = vpop.f32.mrf.mxu1 }
0x1903   :  { %v1040_v51 = vadd.f32 %v4359_v49, %v1039_v50 }
0x1904   :  { %v3635_v52 = vpop.f32.mrf.mxu1 }
0x1905   :  { %1043 = vst.msk [vmem:[%s4874_s8] sm:$0xff] %vm34_vm1, %v1040_v51  ;;  %v1046_v53 = vsel %vm34_vm1, %v1040_v51, -inf }
0x1906   :  { %1047 = vmax.xlane.f32.xlu0 %v1046_v53 }
0x190a   :  { %v4367_v54 = vpop.f32.mrf.mxu1 }
0x190c   :  { %v3657_v55 = vpop.f32.mrf.mxu1 }
0x198f   :  { %v1048_v58 = vpop.xlane.xlu0 %1047 }
0x1990   :  { %vm1049_vm2 = vcmp.eq.f32.partialorder %v1040_v51, %v1048_v58 }
0x1991   :  { %v1050_v59 = vsel %vm1049_vm2, %v4369_v57, 32 }
0x1992   :  { %v1051_v60 = vsel %vm34_vm1, %v1050_v59, 2147483647 }
0x1993   :  { %v1053_v61 = vshra.s32 %v1051_v60, 16  ;;  %v1052_v63 = vand.u32 65535, %v1051_v60 }
0x1995   :  { %v1055_v62 = vcvt.s32.f32 %v1053_v61  ;;  %v1054_v6 = vcvt.s32.f32 %v1052_v63 }
0x1997   :  { %1056 = vmin.xlane.f32.xlu1 %v1055_v62 }
0x1a20   :  { %v1057_v5 = vpop.xlane.xlu1 %1056 }
0x1a21   :  { %vm1058_vm3 = vcmp.eq.f32.partialorder %v1055_v62, %v1057_v5  ;;  %v1063_v12 = vcvt.f32.s32 %v1057_v5 }
0x1a22   :  { %v1059_v7 = vsel %vm1058_vm3, %v1054_v6, inf }
0x1a23   :  { %1060 = vmin.xlane.f32.xlu0 %v1059_v7  ;;  %v1064_v14 = vshll.u32 %v1063_v12, 16 }
0x1aac   :  { %v1061_v13 = vpop.xlane.xlu0 %1060 }
0x1aad   :  { %v1062_v15 = vcvt.f32.s32 %v1061_v13 }
0x1aaf   :  { %v1065_v16 = vadd.s32 %v1064_v14, %v1062_v15 }
0x1ab1   :  { %vm1066_vm4 = vcmp.eq.s32.totalorder %v4369_v57, %v1065_v16 }
0x1ab2   :  { %v3308_v17 = vsel %vm1066_vm4, 1.0, %v4054_v0 }
0x1ab3   :  { %v1069_v18 = vsel %vm34_vm1, %v3308_v17, -inf }
0x1ab4   :  { %v1070_v19 = vrot.slane %v1069_v18, 4 }
0x1ab6   :  { %v1071_v20 = vmax.f32 %v1069_v18, %v1070_v19 }
0x1ab8   :  { %v1072_v21 = vrot.slane %v1071_v20, 2 }
0x1aba   :  { %v1073_v22 = vmax.f32 %v1071_v20, %v1072_v21 }
0x1abc   :  { %v1074_v27 = vrot.slane %v1073_v22, 1 }
0x1abe   :  { %v1075_v28 = vmax.f32 %v1073_v22, %v1074_v27 }
0x1ac0   :  { %3645 = vmatmul.mubr.msk.f32.vlgmr.msra.gmra.mxu0 %vm34_vm1, %v1075_v28 }
0x1ac1   :  { %3659 = vmatpush3.msra.mxu0 %v4315_v4  ;;  %3666 = vmatprep.mubr.msk.f32.mxu0 %vm4055_vm0, %v4054_v0 }
0x1ac2   :  { %3660 = vmatprep.subr.mxu0 %v4054_v0 }
0x1ac3   :  { %3661 = vmatpush3.msra.mxu0 %v4320_v42 }
0x1ac4   :  { %3662 = vmatprep.subr.mxu0 %v4054_v0 }
0x1ac5   :  { %3663 = vmatpush3.msra.mxu0 %v4327_v43 }
0x1ac6   :  { %3664 = vmatprep.subr.mxu0 %v4054_v0 }
0x1ac7   :  { %3665 = vmatpush3.msra.mxu0 %v4334_v44 }
0x1ac8   :  { %3680 = vmatprep.subr.mxu0 %v4054_v0 }
0x1b80   :  { %v1145_v32 = vpop.f32.mrf.mxu0 }
0x1b81   :  { %v1146_v33 = vadd.f32 %v1145_v32, %v4426_v30 }
0x1b82   :  { %v3646_v34 = vpop.f32.mrf.mxu0 }
0x1b83   :  { %v1152_v35 = vrot.slane %v1146_v33, %v4428_v31 }
0x1b85   :  { %v1223_v1 = vadd.f32 %v4367_v54, %v1152_v35 }
0x1b87   :  { %3976 = vtanh.f32 %v1223_v1  ;;  %v3311_v37 = vmul.f32 -1.442695, %v1223_v1 }
0x1b89   :  { %3978 = vpow2.f32 %v3311_v37 }
0x1b94   :  { %v3977_v36 = vpop.eup %3976 }
0x1b95   :  { %1233 = vrot.lane.b32.xlu0 %v3977_v36, %s4056_s14 }
0x1b96   :  { %v3979_v38 = vpop.eup %3978 }
0x1b97   :  { %v1227_v39 = vadd.f32 1.0, %v3979_v38 }
0x1b99   :  { %3980 = vrcp.f32 %v1227_v39 }
0x1ba6   :  { %v3981_v2 = vpop.eup %3980 }
0x1ba7   :  { %v1231_v45 = vmul.f32 %v3981_v2, %v4309_v41 }
0x1c07   :  { %v1234_v3 = vpop.permute.xlu0 %1233 }
0x1c08   :  { %v1236_v40 = vmul.f32 %v3981_v2, %v1234_v3 }
0x1c0a   :  { %1238 = vrot.lane.b32.xlu1 %v1236_v40, %s4056_s14 }
0x1c7c   :  { %v1239_v46 = vpop.permute.xlu1 %1238 }
0x1c7d   :  { %v4436_v47 = vadd.f32 %v1239_v46, %v1231_v45 }
0x1c7f   :  { %3982 = vtanh.f32 %v4436_v47 }
0x1c8c   :  { %v3983_v48 = vpop.eup %3982 }
0x1c8d   :  { %1244 = vrot.lane.b32.xlu1 %v3983_v48, %s4056_s14 }
0x1cff   :  { %v1245_v50 = vpop.permute.xlu1 %1244 }
0x1d00   :  { %v1247_v51 = vmul.f32 %v3981_v2, %v1245_v50 }
0x1d02   :  { %1249 = vrot.lane.b32.xlu0 %v1247_v51, %s4057_s15 }
0x1d74   :  { %v1250_v52 = vpop.permute.xlu0 %1249 }
0x1d75   :  { %3667 = vmatmul.mubr.msk.f32.vlgmr.msra.gmra.mxu0 %vm34_vm1, %v1250_v52 }
0x1d76   :  { %3681 = vmatpush3.msra.mxu0 %v4274_v23  ;;  %3688 = vmatprep.mubr.msk.f32.mxu0 %vm4055_vm0, %v4054_v0 }
0x1d77   :  { %3682 = vmatprep.subr.mxu0 %v4054_v0 }
0x1d78   :  { %3683 = vmatpush3.msra.mxu0 %v4279_v24 }
0x1d79   :  { %3684 = vmatprep.subr.mxu0 %v4054_v0 }
0x1d7a   :  { %3685 = vmatpush3.msra.mxu0 %v4286_v25 }
0x1d7b   :  { %3686 = vmatprep.subr.mxu0 %v4054_v0 }
0x1d7c   :  { %3687 = vmatpush3.msra.mxu0 %v4293_v26 }
0x1d7d   :  { %3689 = vmatmul.mubr.msk.f32.vlgmr.msra.gmra.mxu0 %vm34_vm1, %v1250_v52  ;;  %3702 = vmatprep.subr.mxu0 %v4054_v0 }
0x1d7e   :  { %3703 = vmatpush3.msra.mxu0 %v4376_v8  ;;  %3710 = vmatprep.mubr.msk.f32.mxu0 %vm4055_vm0, %v4054_v0 }
0x1d7f   :  { %3704 = vmatprep.subr.mxu0 %v4054_v0 }
0x1d80   :  { %3705 = vmatpush3.msra.mxu0 %v4384_v9 }
0x1d81   :  { %3706 = vmatprep.subr.mxu0 %v4054_v0 }
0x1d82   :  { %3707 = vmatpush3.msra.mxu0 %v4393_v10 }
0x1d83   :  { %3708 = vmatprep.subr.mxu0 %v4054_v0 }
0x1d84   :  { %3709 = vmatpush3.msra.mxu0 %v4400_v11 }
0x1d85   :  { %3724 = vmatprep.subr.mxu0 %v4054_v0 }
0x1e35   :  { %v1319_v41 = vpop.f32.mrf.mxu0 }
0x1e36   :  { %v1320_v53 = vadd.f32 %v4359_v49, %v1319_v41 }
0x1e37   :  { %v3668_v54 = vpop.f32.mrf.mxu0 }
0x1e38   :  { %3313 = vst.msk [vmem:[%s4874_s8 + $0x8] sm:$0xff] %vm34_vm1, %v1320_v53  ;;  %v1325_v55 = vsel %vm34_vm1, %v1320_v53, -inf }
0x1e39   :  { %1326 = vmax.xlane.f32.xlu1 %v1325_v55 }
0x1e3d   :  { %v1498_v56 = vpop.f32.mrf.mxu0 }
0x1e3f   :  { %v3690_v58 = vpop.f32.mrf.mxu0 }
0x1ec2   :  { %v1327_v59 = vpop.xlane.xlu1 %1326 }
0x1ec3   :  { %vm1328_vm5 = vcmp.eq.f32.partialorder %v1320_v53, %v1327_v59 }
0x1ec4   :  { %v1329_v60 = vsel %vm1328_vm5, %v4369_v57, 32 }
0x1ec5   :  { %v1330_v61 = vsel %vm34_vm1, %v1329_v60, 2147483647 }
0x1ec6   :  { %v1332_v62 = vshra.s32 %v1330_v61, 16  ;;  %v1331_v5 = vand.u32 65535, %v1330_v61 }
0x1ec8   :  { %v1334_v63 = vcvt.s32.f32 %v1332_v62  ;;  %v1333_v7 = vcvt.s32.f32 %v1331_v5 }
0x1eca   :  { %1335 = vmin.xlane.f32.xlu0 %v1334_v63 }
0x1f53   :  { %v1336_v6 = vpop.xlane.xlu0 %1335 }
0x1f54   :  { %vm1337_vm6 = vcmp.eq.f32.partialorder %v1334_v63, %v1336_v6  ;;  %v1342_v13 = vcvt.f32.s32 %v1336_v6 }
0x1f55   :  { %v1338_v12 = vsel %vm1337_vm6, %v1333_v7, inf }
0x1f56   :  { %1339 = vmin.xlane.f32.xlu0 %v1338_v12  ;;  %v1343_v15 = vshll.u32 %v1342_v13, 16 }
0x1fdf   :  { %v1340_v14 = vpop.xlane.xlu0 %1339 }
0x1fe0   :  { %v1341_v16 = vcvt.f32.s32 %v1340_v14 }
0x1fe2   :  { %v1344_v17 = vadd.s32 %v1343_v15, %v1341_v16 }
0x1fe4   :  { %vm1345_vm7 = vcmp.eq.s32.totalorder %v4369_v57, %v1344_v17 }
0x1fe5   :  { %v3314_v18 = vsel %vm1345_vm7, 1.0, %v4054_v0 }
0x1fe6   :  { %v1348_v19 = vsel %vm34_vm1, %v3314_v18, -inf }
0x1fe7   :  { %v1349_v20 = vrot.slane %v1348_v19, 4 }
0x1fe9   :  { %v1350_v21 = vmax.f32 %v1348_v19, %v1349_v20 }
0x1feb   :  { %v1351_v22 = vrot.slane %v1350_v21, 2 }
0x1fed   :  { %v1352_v27 = vmax.f32 %v1350_v21, %v1351_v22 }
0x1fef   :  { %v1353_v28 = vrot.slane %v1352_v27, 1 }
0x1ff1   :  { %v1354_v29 = vmax.f32 %v1352_v27, %v1353_v28 }
0x1ff3   :  { %3678 = vmatmul.mubr.msk.f32.vlgmr.msra.gmra.mxu1 %vm34_vm1, %v1354_v29 }
0x1ff4   :  { %3692 = vmatpush3.msra.mxu1 %v4315_v4  ;;  %3699 = vmatprep.mubr.msk.f32.mxu1 %vm4055_vm0, %v4054_v0 }
0x1ff5   :  { %3693 = vmatprep.subr.mxu1 %v4054_v0 }
0x1ff6   :  { %3694 = vmatpush3.msra.mxu1 %v4320_v42 }
0x1ff7   :  { %3695 = vmatprep.subr.mxu1 %v4054_v0 }
0x1ff8   :  { %3696 = vmatpush3.msra.mxu1 %v4327_v43 }
0x1ff9   :  { %3697 = vmatprep.subr.mxu1 %v4054_v0 }
0x1ffa   :  { %3698 = vmatpush3.msra.mxu1 %v4334_v44 }
0x1ffb   :  { %3713 = vmatprep.subr.mxu1 %v4054_v0 }
0x20b3   :  { %v1424_v32 = vpop.f32.mrf.mxu1 }
0x20b4   :  { %v1425_v33 = vadd.f32 %v1424_v32, %v4426_v30 }
0x20b5   :  { %v3679_v34 = vpop.f32.mrf.mxu1 }
0x20b6   :  { %v1431_v35 = vrot.slane %v1425_v33, %v4428_v31 }
0x20b8   :  { %v1502_v1 = vadd.f32 %v1498_v56, %v1431_v35 }
0x20ba   :  { %3984 = vtanh.f32 %v1502_v1  ;;  %v3317_v37 = vmul.f32 -1.442695, %v1502_v1 }
0x20bc   :  { %3986 = vpow2.f32 %v3317_v37 }
0x20c7   :  { %v3985_v36 = vpop.eup %3984 }
0x20c8   :  { %1512 = vrot.lane.b32.xlu1 %v3985_v36, %s4056_s14 }
0x20c9   :  { %v3987_v38 = vpop.eup %3986 }
0x20ca   :  { %v1506_v39 = vadd.f32 1.0, %v3987_v38 }
0x20cc   :  { %3988 = vrcp.f32 %v1506_v39 }
0x20d9   :  { %v3989_v2 = vpop.eup %3988 }
0x20da   :  { %v1510_v45 = vmul.f32 %v3989_v2, %v4436_v47 }
0x213a   :  { %v1513_v3 = vpop.permute.xlu1 %1512 }
0x213b   :  { %v1515_v40 = vmul.f32 %v3989_v2, %v1513_v3 }
0x213d   :  { %1517 = vrot.lane.b32.xlu0 %v1515_v40, %s4056_s14 }
0x21af   :  { %v1518_v46 = vpop.permute.xlu0 %1517 }
0x21b0   :  { %v4490_v48 = vadd.f32 %v1518_v46, %v1510_v45 }
0x21b2   :  { %3990 = vtanh.f32 %v4490_v48 }
0x21bf   :  { %v3991_v50 = vpop.eup %3990 }
0x21c0   :  { %1523 = vrot.lane.b32.xlu1 %v3991_v50, %s4056_s14 }
0x2232   :  { %v1524_v51 = vpop.permute.xlu1 %1523 }
0x2233   :  { %v1526_v52 = vmul.f32 %v3989_v2, %v1524_v51 }
0x2235   :  { %1528 = vrot.lane.b32.xlu1 %v1526_v52, %s4057_s15 }
0x22a7   :  { %v1529_v41 = vpop.permute.xlu1 %1528 }
0x22a8   :  { %3700 = vmatmul.mubr.msk.f32.vlgmr.msra.gmra.mxu1 %vm34_vm1, %v1529_v41 }
0x22a9   :  { %3714 = vmatpush3.msra.mxu1 %v4274_v23  ;;  %3721 = vmatprep.mubr.msk.f32.mxu1 %vm4055_vm0, %v4054_v0 }
0x22aa   :  { %3715 = vmatprep.subr.mxu1 %v4054_v0 }
0x22ab   :  { %3716 = vmatpush3.msra.mxu1 %v4279_v24 }
0x22ac   :  { %3717 = vmatprep.subr.mxu1 %v4054_v0 }
0x22ad   :  { %3718 = vmatpush3.msra.mxu1 %v4286_v25 }
0x22ae   :  { %3719 = vmatprep.subr.mxu1 %v4054_v0 }
0x22af   :  { %3720 = vmatpush3.msra.mxu1 %v4293_v26 }
0x22b0   :  { %3722 = vmatmul.mubr.msk.f32.vlgmr.msra.gmra.mxu1 %vm34_vm1, %v1529_v41  ;;  %3735 = vmatprep.subr.mxu1 %v4054_v0 }
0x22b1   :  { %3736 = vmatpush3.msra.mxu1 %v4376_v8  ;;  %3743 = vmatprep.mubr.msk.f32.mxu1 %vm4055_vm0, %v4054_v0 }
0x22b2   :  { %3737 = vmatprep.subr.mxu1 %v4054_v0 }
0x22b3   :  { %3738 = vmatpush3.msra.mxu1 %v4384_v9 }
0x22b4   :  { %3739 = vmatprep.subr.mxu1 %v4054_v0 }
0x22b5   :  { %3740 = vmatpush3.msra.mxu1 %v4393_v10 }
0x22b6   :  { %3741 = vmatprep.subr.mxu1 %v4054_v0 }
0x22b7   :  { %3742 = vmatpush3.msra.mxu1 %v4400_v11 }
0x22b8   :  { %3757 = vmatprep.subr.mxu1 %v4054_v0 }
0x2368   :  { %v1598_v47 = vpop.f32.mrf.mxu1 }
0x2369   :  { %v1599_v53 = vadd.f32 %v4359_v49, %v1598_v47 }
0x236a   :  { %v3701_v54 = vpop.f32.mrf.mxu1 }
0x236b   :  { %3319 = vst.msk [vmem:[%s4874_s8 + $0x10] sm:$0xff] %vm34_vm1, %v1599_v53  ;;  %v1604_v55 = vsel %vm34_vm1, %v1599_v53, -inf }
0x236c   :  { %1605 = vmax.xlane.f32.xlu0 %v1604_v55 }
0x2370   :  { %v1777_v56 = vpop.f32.mrf.mxu1 }
0x2372   :  { %v3723_v58 = vpop.f32.mrf.mxu1 }
0x23f5   :  { %v1606_v59 = vpop.xlane.xlu0 %1605 }
0x23f6   :  { %vm1607_vm8 = vcmp.eq.f32.partialorder %v1599_v53, %v1606_v59 }
0x23f7   :  { %v1608_v60 = vsel %vm1607_vm8, %v4369_v57, 32 }
0x23f8   :  { %v1609_v61 = vsel %vm34_vm1, %v1608_v60, 2147483647 }
0x23f9   :  { %v1611_v62 = vshra.s32 %v1609_v61, 16  ;;  %v1610_v5 = vand.u32 65535, %v1609_v61 }
0x23fb   :  { %v1613_v63 = vcvt.s32.f32 %v1611_v62  ;;  %v1612_v7 = vcvt.s32.f32 %v1610_v5 }
0x23fd   :  { %1614 = vmin.xlane.f32.xlu1 %v1613_v63 }
0x2486   :  { %v1615_v6 = vpop.xlane.xlu1 %1614 }
0x2487   :  { %vm1616_vm9 = vcmp.eq.f32.partialorder %v1613_v63, %v1615_v6  ;;  %v1621_v13 = vcvt.f32.s32 %v1615_v6 }
0x2488   :  { %v1617_v12 = vsel %vm1616_vm9, %v1612_v7, inf }
0x2489   :  { %1618 = vmin.xlane.f32.xlu0 %v1617_v12  ;;  %v1622_v15 = vshll.u32 %v1621_v13, 16 }
0x2512   :  { %v1619_v14 = vpop.xlane.xlu0 %1618 }
0x2513   :  { %v1620_v16 = vcvt.f32.s32 %v1619_v14 }
0x2515   :  { %v1623_v17 = vadd.s32 %v1622_v15, %v1620_v16 }
0x2517   :  { %vm1624_vm10 = vcmp.eq.s32.totalorder %v4369_v57, %v1623_v17 }
0x2518   :  { %v3320_v18 = vsel %vm1624_vm10, 1.0, %v4054_v0 }
0x2519   :  { %v1627_v19 = vsel %vm34_vm1, %v3320_v18, -inf }
0x251a   :  { %v1628_v20 = vrot.slane %v1627_v19, 4 }
0x251c   :  { %v1629_v21 = vmax.f32 %v1627_v19, %v1628_v20 }
0x251e   :  { %v1630_v22 = vrot.slane %v1629_v21, 2 }
0x2520   :  { %v1631_v27 = vmax.f32 %v1629_v21, %v1630_v22 }
0x2522   :  { %v1632_v28 = vrot.slane %v1631_v27, 1 }
0x2524   :  { %v1633_v29 = vmax.f32 %v1631_v27, %v1632_v28 }
0x2526   :  { %3711 = vmatmul.mubr.msk.f32.vlgmr.msra.gmra.mxu0 %vm34_vm1, %v1633_v29 }
0x2527   :  { %3725 = vmatpush3.msra.mxu0 %v4315_v4  ;;  %3732 = vmatprep.mubr.msk.f32.mxu0 %vm4055_vm0, %v4054_v0 }
0x2528   :  { %3726 = vmatprep.subr.mxu0 %v4054_v0 }
0x2529   :  { %3727 = vmatpush3.msra.mxu0 %v4320_v42 }
0x252a   :  { %3728 = vmatprep.subr.mxu0 %v4054_v0 }
0x252b   :  { %3729 = vmatpush3.msra.mxu0 %v4327_v43 }
0x252c   :  { %3730 = vmatprep.subr.mxu0 %v4054_v0 }
0x252d   :  { %3731 = vmatpush3.msra.mxu0 %v4334_v44 }
0x252e   :  { %3746 = vmatprep.subr.mxu0 %v4054_v0 }
0x25e6   :  { %v1703_v32 = vpop.f32.mrf.mxu0 }
0x25e7   :  { %v1704_v33 = vadd.f32 %v1703_v32, %v4426_v30 }
0x25e8   :  { %v3712_v34 = vpop.f32.mrf.mxu0 }
0x25e9   :  { %v1710_v35 = vrot.slane %v1704_v33, %v4428_v31 }
0x25eb   :  { %v1781_v1 = vadd.f32 %v1777_v56, %v1710_v35 }
0x25ed   :  { %3992 = vtanh.f32 %v1781_v1  ;;  %v3323_v37 = vmul.f32 -1.442695, %v1781_v1 }
0x25ef   :  { %3994 = vpow2.f32 %v3323_v37 }
0x25fa   :  { %v3993_v36 = vpop.eup %3992 }
0x25fb   :  { %1791 = vrot.lane.b32.xlu0 %v3993_v36, %s4056_s14 }
0x25fc   :  { %v3995_v38 = vpop.eup %3994 }
0x25fd   :  { %v1785_v39 = vadd.f32 1.0, %v3995_v38 }
0x25ff   :  { %3996 = vrcp.f32 %v1785_v39 }
0x260c   :  { %v3997_v2 = vpop.eup %3996 }
0x260d   :  { %v1789_v45 = vmul.f32 %v3997_v2, %v4490_v48 }
0x266d   :  { %v1792_v3 = vpop.permute.xlu0 %1791 }
0x266e   :  { %v1794_v40 = vmul.f32 %v3997_v2, %v1792_v3 }
0x2670   :  { %1796 = vrot.lane.b32.xlu1 %v1794_v40, %s4056_s14 }
0x26e2   :  { %v1797_v46 = vpop.permute.xlu1 %1796 }
0x26e3   :  { %v4544_v50 = vadd.f32 %v1797_v46, %v1789_v45 }
0x26e5   :  { %3998 = vtanh.f32 %v4544_v50 }
0x26f2   :  { %v3999_v51 = vpop.eup %3998 }
0x26f3   :  { %1802 = vrot.lane.b32.xlu1 %v3999_v51, %s4056_s14 }
0x2765   :  { %v1803_v52 = vpop.permute.xlu1 %1802 }
0x2766   :  { %v1805_v41 = vmul.f32 %v3997_v2, %v1803_v52 }
0x2768   :  { %1807 = vrot.lane.b32.xlu0 %v1805_v41, %s4057_s15 }
0x27da   :  { %v1808_v47 = vpop.permute.xlu0 %1807 }
0x27db   :  { %3733 = vmatmul.mubr.msk.f32.vlgmr.msra.gmra.mxu0 %vm34_vm1, %v1808_v47 }
0x27dc   :  { %3747 = vmatpush3.msra.mxu0 %v4274_v23  ;;  %3754 = vmatprep.mubr.msk.f32.mxu0 %vm4055_vm0, %v4054_v0 }
0x27dd   :  { %3748 = vmatprep.subr.mxu0 %v4054_v0 }
0x27de   :  { %3749 = vmatpush3.msra.mxu0 %v4279_v24 }
0x27df   :  { %3750 = vmatprep.subr.mxu0 %v4054_v0 }
0x27e0   :  { %3751 = vmatpush3.msra.mxu0 %v4286_v25 }
0x27e1   :  { %3752 = vmatprep.subr.mxu0 %v4054_v0 }
0x27e2   :  { %3753 = vmatpush3.msra.mxu0 %v4293_v26 }
0x27e3   :  { %3755 = vmatmul.mubr.msk.f32.vlgmr.msra.gmra.mxu0 %vm34_vm1, %v1808_v47  ;;  %3768 = vmatprep.subr.mxu0 %v4054_v0 }
0x27e4   :  { %3769 = vmatpush3.msra.mxu0 %v4376_v8  ;;  %3776 = vmatprep.mubr.msk.f32.mxu0 %vm4055_vm0, %v4054_v0 }
0x27e5   :  { %3770 = vmatprep.subr.mxu0 %v4054_v0 }
0x27e6   :  { %3771 = vmatpush3.msra.mxu0 %v4384_v9 }
0x27e7   :  { %3772 = vmatprep.subr.mxu0 %v4054_v0 }
0x27e8   :  { %3773 = vmatpush3.msra.mxu0 %v4393_v10 }
0x27e9   :  { %3774 = vmatprep.subr.mxu0 %v4054_v0 }
0x27ea   :  { %3775 = vmatpush3.msra.mxu0 %v4400_v11 }
0x27eb   :  { %3790 = vmatprep.subr.mxu0 %v4054_v0 }
0x289b   :  { %v1877_v48 = vpop.f32.mrf.mxu0 }
0x289c   :  { %v1878_v53 = vadd.f32 %v4359_v49, %v1877_v48 }
0x289d   :  { %v3734_v54 = vpop.f32.mrf.mxu0 }
0x289e   :  { %3325 = vst.msk [vmem:[%s4874_s8 + $0x18] sm:$0xff] %vm34_vm1, %v1878_v53  ;;  %v1883_v55 = vsel %vm34_vm1, %v1878_v53, -inf }
0x289f   :  { %1884 = vmax.xlane.f32.xlu1 %v1883_v55 }
0x28a3   :  { %v2056_v56 = vpop.f32.mrf.mxu0 }
0x28a5   :  { %v3756_v58 = vpop.f32.mrf.mxu0 }
0x2928   :  { %v1885_v59 = vpop.xlane.xlu1 %1884 }
0x2929   :  { %vm1886_vm11 = vcmp.eq.f32.partialorder %v1878_v53, %v1885_v59 }
0x292a   :  { %v1887_v60 = vsel %vm1886_vm11, %v4369_v57, 32 }
0x292b   :  { %v1888_v61 = vsel %vm34_vm1, %v1887_v60, 2147483647 }
0x292c   :  { %v1890_v62 = vshra.s32 %v1888_v61, 16  ;;  %v1889_v5 = vand.u32 65535, %v1888_v61 }
0x292e   :  { %v1892_v63 = vcvt.s32.f32 %v1890_v62  ;;  %v1891_v7 = vcvt.s32.f32 %v1889_v5 }
0x2930   :  { %1893 = vmin.xlane.f32.xlu0 %v1892_v63 }
0x29b9   :  { %v1894_v6 = vpop.xlane.xlu0 %1893 }
0x29ba   :  { %vm1895_vm12 = vcmp.eq.f32.partialorder %v1892_v63, %v1894_v6  ;;  %v1900_v13 = vcvt.f32.s32 %v1894_v6 }
0x29bb   :  { %v1896_v12 = vsel %vm1895_vm12, %v1891_v7, inf }
0x29bc   :  { %1897 = vmin.xlane.f32.xlu0 %v1896_v12  ;;  %v1901_v15 = vshll.u32 %v1900_v13, 16 }
0x2a45   :  { %v1898_v14 = vpop.xlane.xlu0 %1897 }
0x2a46   :  { %v1899_v16 = vcvt.f32.s32 %v1898_v14 }
0x2a48   :  { %v1902_v17 = vadd.s32 %v1901_v15, %v1899_v16 }
0x2a4a   :  { %vm1903_vm13 = vcmp.eq.s32.totalorder %v4369_v57, %v1902_v17 }
0x2a4b   :  { %v3326_v18 = vsel %vm1903_vm13, 1.0, %v4054_v0 }
0x2a4c   :  { %v1906_v19 = vsel %vm34_vm1, %v3326_v18, -inf }
0x2a4d   :  { %v1907_v20 = vrot.slane %v1906_v19, 4 }
0x2a4f   :  { %v1908_v21 = vmax.f32 %v1906_v19, %v1907_v20 }
0x2a51   :  { %v1909_v22 = vrot.slane %v1908_v21, 2 }
0x2a53   :  { %v1910_v27 = vmax.f32 %v1908_v21, %v1909_v22 }
0x2a55   :  { %v1911_v28 = vrot.slane %v1910_v27, 1 }
0x2a57   :  { %v1912_v29 = vmax.f32 %v1910_v27, %v1911_v28 }
0x2a59   :  { %3744 = vmatmul.mubr.msk.f32.vlgmr.msra.gmra.mxu1 %vm34_vm1, %v1912_v29 }
0x2a5a   :  { %3758 = vmatpush3.msra.mxu1 %v4315_v4  ;;  %3765 = vmatprep.mubr.msk.f32.mxu1 %vm4055_vm0, %v4054_v0 }
0x2a5b   :  { %3759 = vmatprep.subr.mxu1 %v4054_v0 }
0x2a5c   :  { %3760 = vmatpush3.msra.mxu1 %v4320_v42 }
0x2a5d   :  { %3761 = vmatprep.subr.mxu1 %v4054_v0 }
0x2a5e   :  { %3762 = vmatpush3.msra.mxu1 %v4327_v43 }
0x2a5f   :  { %3763 = vmatprep.subr.mxu1 %v4054_v0 }
0x2a60   :  { %3764 = vmatpush3.msra.mxu1 %v4334_v44 }
0x2a61   :  { %3779 = vmatprep.subr.mxu1 %v4054_v0 }
0x2b19   :  { %v1982_v32 = vpop.f32.mrf.mxu1 }
0x2b1a   :  { %v1983_v33 = vadd.f32 %v1982_v32, %v4426_v30 }
0x2b1b   :  { %v3745_v34 = vpop.f32.mrf.mxu1 }
0x2b1c   :  { %v1989_v35 = vrot.slane %v1983_v33, %v4428_v31 }
0x2b1e   :  { %v2060_v1 = vadd.f32 %v2056_v56, %v1989_v35 }
0x2b20   :  { %4000 = vtanh.f32 %v2060_v1  ;;  %v3329_v37 = vmul.f32 -1.442695, %v2060_v1 }
0x2b22   :  { %4002 = vpow2.f32 %v3329_v37 }
0x2b2d   :  { %v4001_v36 = vpop.eup %4000 }
0x2b2e   :  { %2070 = vrot.lane.b32.xlu1 %v4001_v36, %s4056_s14 }
0x2b2f   :  { %v4003_v38 = vpop.eup %4002 }
0x2b30   :  { %v2064_v39 = vadd.f32 1.0, %v4003_v38 }
0x2b32   :  { %4004 = vrcp.f32 %v2064_v39 }
0x2b3f   :  { %v4005_v2 = vpop.eup %4004 }
0x2b40   :  { %v2068_v45 = vmul.f32 %v4005_v2, %v4544_v50 }
0x2ba0   :  { %v2071_v3 = vpop.permute.xlu1 %2070 }
0x2ba1   :  { %v2073_v40 = vmul.f32 %v4005_v2, %v2071_v3 }
0x2ba3   :  { %2075 = vrot.lane.b32.xlu0 %v2073_v40, %s4056_s14  ;;  %v4661_v40 = vld [vmem:[%s4870_s4 + $0x18] sm:$0xff] }
0x2c15   :  { %v2076_v46 = vpop.permute.xlu0 %2075 }
0x2c16   :  { %v4598_v51 = vadd.f32 %v2076_v46, %v2068_v45  ;;  %v4670_v45 = vld [vmem:[%s4870_s4 + $0x10] sm:$0xff]  ;;  %v4677_v46 = vld [vmem:[%s4870_s4 + $0x8] sm:$0xff] }
0x2c18   :  { %4006 = vtanh.f32 %v4598_v51 }
0x2c25   :  { %v4007_v52 = vpop.eup %4006 }
0x2c26   :  { %2081 = vrot.lane.b32.xlu1 %v4007_v52, %s4056_s14 }
0x2c98   :  { %v2082_v41 = vpop.permute.xlu1 %2081 }
0x2c99   :  { %v2084_v47 = vmul.f32 %v4005_v2, %v2082_v41 }
0x2c9b   :  { %2086 = vrot.lane.b32.xlu1 %v2084_v47, %s4057_s15 }
0x2d0d   :  { %v2087_v48 = vpop.permute.xlu1 %2086 }
0x2d0e   :  { %3766 = vmatmul.mubr.msk.f32.vlgmr.msra.gmra.mxu1 %vm34_vm1, %v2087_v48 }
0x2d0f   :  { %3780 = vmatpush3.msra.mxu1 %v4274_v23  ;;  %3787 = vmatprep.mubr.msk.f32.mxu1 %vm4055_vm0, %v4054_v0 }
0x2d10   :  { %3781 = vmatprep.subr.mxu1 %v4054_v0 }
0x2d11   :  { %3782 = vmatpush3.msra.mxu1 %v4279_v24 }
0x2d12   :  { %3783 = vmatprep.subr.mxu1 %v4054_v0 }
0x2d13   :  { %3784 = vmatpush3.msra.mxu1 %v4286_v25 }
0x2d14   :  { %3785 = vmatprep.subr.mxu1 %v4054_v0 }
0x2d15   :  { %3786 = vmatpush3.msra.mxu1 %v4293_v26 }
0x2d16   :  { %3788 = vmatmul.mubr.msk.f32.vlgmr.msra.gmra.mxu1 %vm34_vm1, %v2087_v48  ;;  %3801 = vmatprep.subr.mxu1 %v4054_v0 }
0x2d17   :  { %3802 = vmatpush3.msra.mxu1 %v4376_v8  ;;  %3809 = vmatprep.mubr.msk.f32.mxu1 %vm4055_vm0, %v4054_v0 }
0x2d18   :  { %3803 = vmatprep.subr.mxu1 %v4054_v0 }
0x2d19   :  { %3804 = vmatpush3.msra.mxu1 %v4384_v9 }
0x2d1a   :  { %3805 = vmatprep.subr.mxu1 %v4054_v0 }
0x2d1b   :  { %3806 = vmatpush3.msra.mxu1 %v4393_v10 }
0x2d1c   :  { %3807 = vmatprep.subr.mxu1 %v4054_v0 }
0x2d1d   :  { %3808 = vmatpush3.msra.mxu1 %v4400_v11 }
0x2d1e   :  { %3823 = vmatprep.subr.mxu1 %v4054_v0 }
0x2dce   :  { %v2156_v23 = vpop.f32.mrf.mxu1 }
0x2dcf   :  { %v2157_v24 = vadd.f32 %v4359_v49, %v2156_v23 }
0x2dd0   :  { %v3767_v25 = vpop.f32.mrf.mxu1 }
0x2dd1   :  { %3331 = vst.msk [vmem:[%s4874_s8 + $0x20] sm:$0xff] %vm34_vm1, %v2157_v24  ;;  %v2162_v26 = vsel %vm34_vm1, %v2157_v24, -inf }
0x2dd2   :  { %2163 = vmax.xlane.f32.xlu0 %v2162_v26 }
0x2dd6   :  { %v2335_v50 = vpop.f32.mrf.mxu1 }
0x2dd8   :  { %v3789_v53 = vpop.f32.mrf.mxu1 }
0x2e5b   :  { %v2164_v54 = vpop.xlane.xlu0 %2163 }
0x2e5c   :  { %vm2165_vm14 = vcmp.eq.f32.partialorder %v2157_v24, %v2164_v54 }
0x2e5d   :  { %v2166_v55 = vsel %vm2165_vm14, %v4369_v57, 32 }
0x2e5e   :  { %v2167_v56 = vsel %vm34_vm1, %v2166_v55, 2147483647 }
0x2e5f   :  { %v2169_v58 = vshra.s32 %v2167_v56, 16  ;;  %v2168_v60 = vand.u32 65535, %v2167_v56 }
0x2e61   :  { %v2171_v59 = vcvt.s32.f32 %v2169_v58  ;;  %v2170_v62 = vcvt.s32.f32 %v2168_v60 }
0x2e63   :  { %2172 = vmin.xlane.f32.xlu1 %v2171_v59 }
0x2eec   :  { %v2173_v61 = vpop.xlane.xlu1 %2172 }
0x2eed   :  { %vm2174_vm15 = vcmp.eq.f32.partialorder %v2171_v59, %v2173_v61  ;;  %v2179_v5 = vcvt.f32.s32 %v2173_v61 }
0x2eee   :  { %v2175_v63 = vsel %vm2174_vm15, %v2170_v62, inf }
0x2eef   :  { %2176 = vmin.xlane.f32.xlu0 %v2175_v63  ;;  %v2180_v7 = vshll.u32 %v2179_v5, 16 }
0x2f78   :  { %v2177_v6 = vpop.xlane.xlu0 %2176 }
0x2f79   :  { %v2178_v12 = vcvt.f32.s32 %v2177_v6 }
0x2f7b   :  { %v2181_v13 = vadd.s32 %v2180_v7, %v2178_v12 }
0x2f7d   :  { %vm2182_vm2 = vcmp.eq.s32.totalorder %v4369_v57, %v2181_v13  ;;  %v4714_v13 = vld [vmem:[%s4872_s6 + $0x18] sm:$0xff] }
0x2f7e   :  { %v3332_v14 = vsel %vm2182_vm2, 1.0, %v4054_v0 }
0x2f7f   :  { %v2185_v15 = vsel %vm34_vm1, %v3332_v14, -inf  ;;  %v4723_v14 = vld [vmem:[%s4872_s6 + $0x10] sm:$0xff] }
0x2f80   :  { %v2186_v16 = vrot.slane %v2185_v15, 4 }
0x2f82   :  { %v2187_v17 = vmax.f32 %v2185_v15, %v2186_v16  ;;  %v4730_v15 = vld [vmem:[%s4872_s6 + $0x8] sm:$0xff]  ;;  %v4737_v16 = vld [vmem:[%s4872_s6] sm:$0xff] }
0x2f84   :  { %v2188_v18 = vrot.slane %v2187_v17, 2 }
0x2f86   :  { %v2189_v19 = vmax.f32 %v2187_v17, %v2188_v18 }
0x2f88   :  { %v2190_v20 = vrot.slane %v2189_v19, 1 }
0x2f8a   :  { %v2191_v21 = vmax.f32 %v2189_v19, %v2190_v20 }
0x2f8c   :  { %3777 = vmatmul.mubr.msk.f32.vlgmr.msra.gmra.mxu0 %vm34_vm1, %v2191_v21 }
0x2f8d   :  { %3791 = vmatpush3.msra.mxu0 %v4315_v4  ;;  %3798 = vmatprep.mubr.msk.f32.mxu0 %vm4055_vm0, %v4054_v0 }
0x2f8e   :  { %3792 = vmatprep.subr.mxu0 %v4054_v0 }
0x2f8f   :  { %3793 = vmatpush3.msra.mxu0 %v4320_v42 }
0x2f90   :  { %3794 = vmatprep.subr.mxu0 %v4054_v0 }
0x2f91   :  { %3795 = vmatpush3.msra.mxu0 %v4327_v43 }
0x2f92   :  { %3796 = vmatprep.subr.mxu0 %v4054_v0 }
0x2f93   :  { %3797 = vmatpush3.msra.mxu0 %v4334_v44 }
0x2f94   :  { %3812 = vmatprep.subr.mxu0 %v4054_v0 }
0x304c   :  { %v2261_v22 = vpop.f32.mrf.mxu0 }
0x304d   :  { %v2262_v4 = vadd.f32 %v2261_v22, %v4426_v30 }
0x304e   :  { %v3778_v27 = vpop.f32.mrf.mxu0 }
0x304f   :  { %v2268_v28 = vrot.slane %v2262_v4, %v4428_v31 }
0x3051   :  { %v2339_v29 = vadd.f32 %v2335_v50, %v2268_v28 }
0x3053   :  { %4008 = vtanh.f32 %v2339_v29  ;;  %v3335_v42 = vmul.f32 -1.442695, %v2339_v29 }
0x3055   :  { %4010 = vpow2.f32 %v3335_v42 }
0x3060   :  { %v4009_v32 = vpop.eup %4008 }
0x3061   :  { %2349 = vrot.lane.b32.xlu0 %v4009_v32, %s4056_s14 }
0x3062   :  { %v4011_v43 = vpop.eup %4010 }
0x3063   :  { %v2343_v33 = vadd.f32 1.0, %v4011_v43 }
0x3065   :  { %4012 = vrcp.f32 %v2343_v33 }
0x3072   :  { %v4013_v34 = vpop.eup %4012 }
0x3073   :  { %v2347_v1 = vmul.f32 %v4013_v34, %v4598_v51  ;;  %v4684_v51 = vld [vmem:[%s4870_s4] sm:$0xff] }
0x30d3   :  { %v2350_v44 = vpop.permute.xlu0 %2349 }
0x30d4   :  { %v2352_v35 = vmul.f32 %v4013_v34, %v2350_v44 }
0x30d6   :  { %2354 = vrot.lane.b32.xlu1 %v2352_v35, %s4056_s14 }
0x3148   :  { %v2355_v36 = vpop.permute.xlu1 %2354 }
0x3149   :  { %v4652_v37 = vadd.f32 %v2355_v36, %v2347_v1  ;;  %v4048_v36 = vld [vmem:[%s4875_s3 + $0x18] sm:$0xff] }
0x314b   :  { %4014 = vtanh.f32 %v4652_v37 }
0x3158   :  { %v4015_v38 = vpop.eup %4014 }
0x3159   :  { %2360 = vrot.lane.b32.xlu1 %v4015_v38, %s4056_s14  ;;  %v4050_v38 = vld [vmem:[%s4875_s3 + $0x8] sm:$0xff] }
0x31cb   :  { %v2361_v39 = vpop.permute.xlu1 %2360 }
0x31cc   :  { %v2363_v2 = vmul.f32 %v4013_v34, %v2361_v39  ;;  %v4051_v39 = vld [vmem:[%s4875_s3] sm:$0xff] }
0x31ce   :  { %2365 = vrot.lane.b32.xlu0 %v2363_v2, %s4057_s15 }
0x3240   :  { %v2366_v3 = vpop.permute.xlu0 %2365 }
0x3241   :  { %3799 = vmatmul.mubr.msk.f32.vlgmr.msra.gmra.mxu0 %vm34_vm1, %v2366_v3 }
0x3242   :  { %3813 = vmatpush3.msra.mxu0 %v4661_v40  ;;  %3820 = vmatprep.mubr.msk.f32.mxu0 %vm4055_vm0, %v4054_v0 }
0x3243   :  { %3814 = vmatprep.subr.mxu0 %v4054_v0 }
0x3244   :  { %3815 = vmatpush3.msra.mxu0 %v4670_v45 }
0x3245   :  { %3816 = vmatprep.subr.mxu0 %v4054_v0 }
0x3246   :  { %3817 = vmatpush3.msra.mxu0 %v4677_v46 }
0x3247   :  { %3818 = vmatprep.subr.mxu0 %v4054_v0 }
0x3248   :  { %3819 = vmatpush3.msra.mxu0 %v4684_v51 }
0x3249   :  { %3821 = vmatmul.mubr.msk.f32.vlgmr.msra.gmra.mxu0 %vm34_vm1, %v2366_v3  ;;  %3834 = vmatprep.subr.mxu0 %v4054_v0  ;;  %v4784_v3 = vld [vmem:[%s4873_s7] ss:$0 sm:$0xff] }
0x324a   :  { %3835 = vmatpush3.msra.mxu0 %v4376_v8  ;;  %3842 = vmatprep.mubr.msk.f32.mxu0 %vm4055_vm0, %v4054_v0 }
0x324b   :  { %3836 = vmatprep.subr.mxu0 %v4054_v0 }
0x324c   :  { %3837 = vmatpush3.msra.mxu0 %v4384_v9 }
0x324d   :  { %3838 = vmatprep.subr.mxu0 %v4054_v0 }
0x324e   :  { %3839 = vmatpush3.msra.mxu0 %v4393_v10 }
0x324f   :  { %3840 = vmatprep.subr.mxu0 %v4054_v0 }
0x3250   :  { %3841 = vmatpush3.msra.mxu0 %v4400_v11 }
0x3251   :  { %3856 = vmatprep.subr.mxu0 %v4054_v0 }
0x3301   :  { %v2435_v52 = vpop.f32.mrf.mxu0 }
0x3302   :  { %v2436_v8 = vadd.f32 %v4359_v49, %v2435_v52 }
0x3303   :  { %v3800_v41 = vpop.f32.mrf.mxu0 }
0x3304   :  { %3337 = vst.msk [vmem:[%s4874_s8 + $0x28] sm:$0xff] %vm34_vm1, %v2436_v8  ;;  %v2441_v9 = vsel %vm34_vm1, %v2436_v8, -inf }
0x3305   :  { %2442 = vmax.xlane.f32.xlu1 %v2441_v9 }
0x3309   :  { %v2614_v47 = vpop.f32.mrf.mxu0 }
0x330b   :  { %v3822_v10 = vpop.f32.mrf.mxu0 }
0x338e   :  { %v2443_v48 = vpop.xlane.xlu1 %2442 }
0x338f   :  { %vm2444_vm3 = vcmp.eq.f32.partialorder %v2436_v8, %v2443_v48 }
0x3390   :  { %v2445_v11 = vsel %vm2444_vm3, %v4369_v57, 32 }
0x3391   :  { %v2446_v23 = vsel %vm34_vm1, %v2445_v11, 2147483647 }
0x3392   :  { %v2448_v24 = vshra.s32 %v2446_v23, 16  ;;  %v2447_v49 = vand.u32 65535, %v2446_v23 }
0x3394   :  { %v2450_v25 = vcvt.s32.f32 %v2448_v24  ;;  %v2449_v50 = vcvt.s32.f32 %v2447_v49 }
0x3396   :  { %2451 = vmin.xlane.f32.xlu0 %v2450_v25 }
0x341f   :  { %v2452_v26 = vpop.xlane.xlu0 %2451 }
0x3420   :  { %vm2453_vm4 = vcmp.eq.f32.partialorder %v2450_v25, %v2452_v26  ;;  %v2458_v54 = vcvt.f32.s32 %v2452_v26 }
0x3421   :  { %v2454_v53 = vsel %vm2453_vm4, %v2449_v50, inf }
0x3422   :  { %2455 = vmin.xlane.f32.xlu0 %v2454_v53  ;;  %v2459_v56 = vshll.u32 %v2458_v54, 16 }
0x34ab   :  { %v2456_v55 = vpop.xlane.xlu0 %2455 }
0x34ac   :  { %v2457_v58 = vcvt.f32.s32 %v2456_v55 }
0x34ae   :  { %v2460_v59 = vadd.s32 %v2459_v56, %v2457_v58 }
0x34b0   :  { %vm2461_vm5 = vcmp.eq.s32.totalorder %v4369_v57, %v2460_v59 }
0x34b1   :  { %v3338_v60 = vsel %vm2461_vm5, 1.0, %v4054_v0 }
0x34b2   :  { %v2464_v61 = vsel %vm34_vm1, %v3338_v60, -inf }
0x34b3   :  { %v2465_v62 = vrot.slane %v2464_v61, 4 }
0x34b5   :  { %v2466_v63 = vmax.f32 %v2464_v61, %v2465_v62 }
0x34b7   :  { %v2467_v5 = vrot.slane %v2466_v63, 2 }
0x34b9   :  { %v2468_v6 = vmax.f32 %v2466_v63, %v2467_v5 }
0x34bb   :  { %v2469_v7 = vrot.slane %v2468_v6, 1 }
0x34bd   :  { %v2470_v12 = vmax.f32 %v2468_v6, %v2469_v7 }
0x34bf   :  { %3810 = vmatmul.mubr.msk.f32.vlgmr.msra.gmra.mxu1 %vm34_vm1, %v2470_v12 }
0x34c0   :  { %3824 = vmatpush3.msra.mxu1 %v4714_v13  ;;  %3831 = vmatprep.mubr.msk.f32.mxu1 %vm4055_vm0, %v4054_v0 }
0x34c1   :  { %3825 = vmatprep.subr.mxu1 %v4054_v0 }
0x34c2   :  { %3826 = vmatpush3.msra.mxu1 %v4723_v14 }
0x34c3   :  { %3827 = vmatprep.subr.mxu1 %v4054_v0 }
0x34c4   :  { %3828 = vmatpush3.msra.mxu1 %v4730_v15 }
0x34c5   :  { %3829 = vmatprep.subr.mxu1 %v4054_v0 }
0x34c6   :  { %3830 = vmatpush3.msra.mxu1 %v4737_v16 }
0x34c7   :  { %3845 = vmatprep.subr.mxu1 %v4054_v0 }
0x357f   :  { %v2540_v17 = vpop.f32.mrf.mxu1 }
0x3580   :  { %v2541_v18 = vadd.f32 %v2540_v17, %v4426_v30  ;;  %v4811_v17 = vld [vmem:[%s4876_s5] sm:$0x1] }
0x3581   :  { %v3811_v19 = vpop.f32.mrf.mxu1 }
0x3582   :  { %v2547_v20 = vrot.slane %v2541_v18, %v4428_v31 }
0x3584   :  { %v2618_v21 = vadd.f32 %v2614_v47, %v2547_v20 }
0x3586   :  { %4016 = vtanh.f32 %v2618_v21  ;;  %v3341_v4 = vmul.f32 -1.442695, %v2618_v21 }
0x3588   :  { %4018 = vpow2.f32 %v3341_v4 }
0x3593   :  { %v4017_v22 = vpop.eup %4016 }
0x3594   :  { %2628 = vrot.lane.b32.xlu1 %v4017_v22, %s4056_s14 }
0x3595   :  { %v4019_v27 = vpop.eup %4018 }
0x3596   :  { %v2622_v28 = vadd.f32 1.0, %v4019_v27 }
0x3598   :  { %4020 = vrcp.f32 %v2622_v28 }
0x35a5   :  { %v4021_v29 = vpop.eup %4020 }
0x35a6   :  { %v2626_v30 = vmul.f32 %v4021_v29, %v4652_v37  ;;  %v4049_v37 = vld [vmem:[%s4875_s3 + $0x10] sm:$0xff] }
0x3606   :  { %v2629_v32 = vpop.permute.xlu1 %2628 }
0x3607   :  { %v2631_v42 = vmul.f32 %v4021_v29, %v2629_v32 }
0x3609   :  { %2633 = vrot.lane.b32.xlu0 %v2631_v42, %s4056_s14 }
0x367b   :  { %v2634_v43 = vpop.permute.xlu0 %2633 }
0x367c   :  { %v4746_v33 = vadd.f32 %v2634_v43, %v2626_v30 }
0x367e   :  { %4022 = vtanh.f32 %v4746_v33 }
0x368b   :  { %v4023_v34 = vpop.eup %4022 }
0x368c   :  { %2639 = vrot.lane.b32.xlu1 %v4023_v34, %s4056_s14 }
0x36fe   :  { %v2640_v44 = vpop.permute.xlu1 %2639 }
0x36ff   :  { %v2642_v35 = vmul.f32 %v4021_v29, %v2640_v44 }
0x3701   :  { %2644 = vrot.lane.b32.xlu1 %v2642_v35, %s4057_s15 }
0x3773   :  { %v2645_v1 = vpop.permute.xlu1 %2644 }
0x3774   :  { %3832 = vmatmul.mubr.msk.f32.vlgmr.msra.gmra.mxu1 %vm34_vm1, %v2645_v1 }
0x3775   :  { %3846 = vmatpush3.msra.mxu1 %v4661_v40  ;;  %3853 = vmatprep.mubr.msk.f32.mxu1 %vm4055_vm0, %v4054_v0 }
0x3776   :  { %3847 = vmatprep.subr.mxu1 %v4054_v0 }
0x3777   :  { %3848 = vmatpush3.msra.mxu1 %v4670_v45 }
0x3778   :  { %3849 = vmatprep.subr.mxu1 %v4054_v0 }
0x3779   :  { %3850 = vmatpush3.msra.mxu1 %v4677_v46 }
0x377a   :  { %3851 = vmatprep.subr.mxu1 %v4054_v0 }
0x377b   :  { %3852 = vmatpush3.msra.mxu1 %v4684_v51 }
0x377c   :  { %3854 = vmatmul.mubr.msk.f32.vlgmr.msra.gmra.mxu1 %vm34_vm1, %v2645_v1  ;;  %3867 = vmatprep.subr.mxu1 %v4054_v0 }
0x377d   :  { %3868 = vmatpush3.msra.mxu1 %v4048_v36  ;;  %3875 = vmatprep.mubr.msk.f32.mxu1 %vm4055_vm0, %v4054_v0 }
0x377e   :  { %3869 = vmatprep.subr.mxu1 %v4054_v0 }
0x377f   :  { %3870 = vmatpush3.msra.mxu1 %v4049_v37 }
0x3780   :  { %3871 = vmatprep.subr.mxu1 %v4054_v0 }
0x3781   :  { %3872 = vmatpush3.msra.mxu1 %v4050_v38 }
0x3782   :  { %3873 = vmatprep.subr.mxu1 %v4054_v0 }
0x3783   :  { %3874 = vmatpush3.msra.mxu1 %v4051_v39 }
0x3784   :  { %3889 = vmatprep.subr.mxu1 %v4054_v0 }
0x3834   :  { %v2714_v2 = vpop.f32.mrf.mxu1 }
0x3835   :  { %v2715_v52 = vadd.f32 %v4784_v3, %v2714_v2 }
0x3836   :  { %v3833_v8 = vpop.f32.mrf.mxu1 }
0x3837   :  { %3343 = vst.msk [vmem:[%s4874_s8 + $0x30] sm:$0xff] %vm34_vm1, %v2715_v52  ;;  %v2720_v41 = vsel %vm34_vm1, %v2715_v52, -inf }
0x3838   :  { %2721 = vmax.xlane.f32.xlu0 %v2720_v41 }
0x383c   :  { %v2893_v9 = vpop.f32.mrf.mxu1 }
0x383e   :  { %v3855_v47 = vpop.f32.mrf.mxu1 }
0x38c1   :  { %v2722_v10 = vpop.xlane.xlu0 %2721 }
0x38c2   :  { %vm2723_vm6 = vcmp.eq.f32.partialorder %v2715_v52, %v2722_v10 }
0x38c3   :  { %v2724_v48 = vsel %vm2723_vm6, %v4369_v57, 32 }
0x38c4   :  { %v2725_v11 = vsel %vm34_vm1, %v2724_v48, 2147483647 }
0x38c5   :  { %v2727_v23 = vshra.s32 %v2725_v11, 16  ;;  %v2726_v25 = vand.u32 65535, %v2725_v11 }
0x38c7   :  { %v2729_v24 = vcvt.s32.f32 %v2727_v23  ;;  %v2728_v26 = vcvt.s32.f32 %v2726_v25 }
0x38c9   :  { %2730 = vmin.xlane.f32.xlu1 %v2729_v24 }
0x3952   :  { %v2731_v49 = vpop.xlane.xlu1 %2730 }
0x3953   :  { %vm2732_vm7 = vcmp.eq.f32.partialorder %v2729_v24, %v2731_v49  ;;  %v2737_v53 = vcvt.f32.s32 %v2731_v49 }
0x3954   :  { %v2733_v50 = vsel %vm2732_vm7, %v2728_v26, inf }
0x3955   :  { %2734 = vmin.xlane.f32.xlu0 %v2733_v50  ;;  %v2738_v55 = vshll.u32 %v2737_v53, 16 }
0x39de   :  { %v2735_v54 = vpop.xlane.xlu0 %2734 }
0x39df   :  { %v2736_v56 = vcvt.f32.s32 %v2735_v54 }
0x39e1   :  { %v2739_v58 = vadd.s32 %v2738_v55, %v2736_v56 }
0x39e3   :  { %vm2740_vm8 = vcmp.eq.s32.totalorder %v4369_v57, %v2739_v58 }
0x39e4   :  { %v3344_v59 = vsel %vm2740_vm8, 1.0, %v4054_v0 }
0x39e5   :  { %v2743_v60 = vsel %vm34_vm1, %v3344_v59, -inf }
0x39e6   :  { %v2744_v61 = vrot.slane %v2743_v60, 4 }
0x39e8   :  { %v2745_v62 = vmax.f32 %v2743_v60, %v2744_v61 }
0x39ea   :  { %v2746_v63 = vrot.slane %v2745_v62, 2 }
0x39ec   :  { %v2747_v5 = vmax.f32 %v2745_v62, %v2746_v63 }
0x39ee   :  { %v2748_v6 = vrot.slane %v2747_v5, 1 }
0x39f0   :  { %v2749_v7 = vmax.f32 %v2747_v5, %v2748_v6 }
0x39f2   :  { %3843 = vmatmul.mubr.msk.f32.vlgmr.msra.gmra.mxu0 %vm34_vm1, %v2749_v7 }
0x39f3   :  { %3857 = vmatpush3.msra.mxu0 %v4714_v13  ;;  %3864 = vmatprep.mubr.msk.f32.mxu0 %vm4055_vm0, %v4054_v0 }
0x39f4   :  { %3858 = vmatprep.subr.mxu0 %v4054_v0 }
0x39f5   :  { %3859 = vmatpush3.msra.mxu0 %v4723_v14 }
0x39f6   :  { %3860 = vmatprep.subr.mxu0 %v4054_v0 }
0x39f7   :  { %3861 = vmatpush3.msra.mxu0 %v4730_v15 }
0x39f8   :  { %3862 = vmatprep.subr.mxu0 %v4054_v0 }
0x39f9   :  { %3863 = vmatpush3.msra.mxu0 %v4737_v16 }
0x39fa   :  { %3878 = vmatprep.subr.mxu0 %v4054_v0 }
0x3ab2   :  { %v2819_v12 = vpop.f32.mrf.mxu0 }
0x3ab3   :  { %v2820_v18 = vadd.f32 %v4811_v17, %v2819_v12 }
0x3ab4   :  { %v3844_v19 = vpop.f32.mrf.mxu0 }
0x3ab5   :  { %v2826_v20 = vrot.slane %v2820_v18, %v4428_v31 }
0x3ab7   :  { %v2897_v21 = vadd.f32 %v2893_v9, %v2826_v20 }
0x3ab9   :  { %4024 = vtanh.f32 %v2897_v21  ;;  %v3347_v4 = vmul.f32 -1.442695, %v2897_v21 }
0x3abb   :  { %4026 = vpow2.f32 %v3347_v4 }
0x3ac6   :  { %v4025_v22 = vpop.eup %4024 }
0x3ac7   :  { %2907 = vrot.lane.b32.xlu0 %v4025_v22, %s4056_s14 }
0x3ac8   :  { %v4027_v27 = vpop.eup %4026 }
0x3ac9   :  { %v2901_v28 = vadd.f32 1.0, %v4027_v27 }
0x3acb   :  { %4028 = vrcp.f32 %v2901_v28 }
0x3ad8   :  { %v4029_v29 = vpop.eup %4028 }
0x3ad9   :  { %v2905_v30 = vmul.f32 %v4029_v29, %v4746_v33 }
0x3b39   :  { %v2908_v32 = vpop.permute.xlu0 %2907 }
0x3b3a   :  { %v2910_v42 = vmul.f32 %v4029_v29, %v2908_v32 }
0x3b3c   :  { %2912 = vrot.lane.b32.xlu1 %v2910_v42, %s4056_s14 }
0x3bae   :  { %v2913_v43 = vpop.permute.xlu1 %2912 }
0x3baf   :  { %v4818_v34 = vadd.f32 %v2913_v43, %v2905_v30 }
0x3bb1   :  { %4030 = vtanh.f32 %v4818_v34 }
0x3bbe   :  { %v4031_v44 = vpop.eup %4030 }
0x3bbf   :  { %2918 = vrot.lane.b32.xlu1 %v4031_v44, %s4056_s14 }
0x3c31   :  { %v2919_v35 = vpop.permute.xlu1 %2918 }
0x3c32   :  { %v2921_v1 = vmul.f32 %v4029_v29, %v2919_v35 }
0x3c34   :  { %2923 = vrot.lane.b32.xlu0 %v2921_v1, %s4057_s15 }
0x3ca6   :  { %v2924_v36 = vpop.permute.xlu0 %2923 }
0x3ca7   :  { %3865 = vmatmul.mubr.msk.f32.vlgmr.msra.gmra.mxu0 %vm34_vm1, %v2924_v36 }
0x3ca8   :  { %3879 = vmatpush3.msra.mxu0 %v4661_v40  ;;  %3886 = vmatprep.mubr.msk.f32.mxu0 %vm4055_vm0, %v4054_v0 }
0x3ca9   :  { %3880 = vmatprep.subr.mxu0 %v4054_v0 }
0x3caa   :  { %3881 = vmatpush3.msra.mxu0 %v4670_v45 }
0x3cab   :  { %3882 = vmatprep.subr.mxu0 %v4054_v0 }
0x3cac   :  { %3883 = vmatpush3.msra.mxu0 %v4677_v46 }
0x3cad   :  { %3884 = vmatprep.subr.mxu0 %v4054_v0 }
0x3cae   :  { %3885 = vmatpush3.msra.mxu0 %v4684_v51 }
0x3caf   :  { %3887 = vmatmul.mubr.msk.f32.vlgmr.msra.gmra.mxu0 %vm34_vm1, %v2924_v36 }
0x3d67   :  { %v2993_v33 = vpop.f32.mrf.mxu0 }
0x3d68   :  { %v2994_v40 = vadd.f32 %v4784_v3, %v2993_v33 }
0x3d69   :  { %v3866_v37 = vpop.f32.mrf.mxu0 }
0x3d6a   :  { %3349 = vst.msk [vmem:[%s4874_s8 + $0x38] sm:$0xff] %vm34_vm1, %v2994_v40  ;;  %v2999_v45 = vsel %vm34_vm1, %v2994_v40, -inf }
0x3d6b   :  { %3000 = vmax.xlane.f32.xlu1 %v2999_v45 }
0x3d6f   :  { %v3172_v38 = vpop.f32.mrf.mxu0 }
0x3d71   :  { %v3888_v46 = vpop.f32.mrf.mxu0 }
0x3df4   :  { %v3001_v39 = vpop.xlane.xlu1 %3000 }
0x3df5   :  { %vm3002_vm9 = vcmp.eq.f32.partialorder %v2994_v40, %v3001_v39 }
0x3df6   :  { %v3003_v51 = vsel %vm3002_vm9, %v4369_v57, 32 }
0x3df7   :  { %v3004_v2 = vsel %vm34_vm1, %v3003_v51, 2147483647 }
0x3df8   :  { %v3006_v52 = vshra.s32 %v3004_v2, 16  ;;  %v3005_v41 = vand.u32 65535, %v3004_v2 }
0x3dfa   :  { %v3008_v8 = vcvt.s32.f32 %v3006_v52  ;;  %v3007_v47 = vcvt.s32.f32 %v3005_v41 }
0x3dfc   :  { %3009 = vmin.xlane.f32.xlu0 %v3008_v8 }
0x3e85   :  { %v3010_v9 = vpop.xlane.xlu0 %3009 }
0x3e86   :  { %vm3011_vm10 = vcmp.eq.f32.partialorder %v3008_v8, %v3010_v9  ;;  %v3016_v48 = vcvt.f32.s32 %v3010_v9 }
0x3e87   :  { %v3012_v10 = vsel %vm3011_vm10, %v3007_v47, inf }
0x3e88   :  { %3013 = vmin.xlane.f32.xlu0 %v3012_v10  ;;  %v3017_v23 = vshll.u32 %v3016_v48, 16 }
0x3f11   :  { %v3014_v11 = vpop.xlane.xlu0 %3013 }
0x3f12   :  { %v3015_v24 = vcvt.f32.s32 %v3014_v11 }
0x3f14   :  { %v3018_v25 = vadd.s32 %v3017_v23, %v3015_v24 }
0x3f16   :  { %vm3019_vm11 = vcmp.eq.s32.totalorder %v4369_v57, %v3018_v25 }
0x3f17   :  { %v3350_v49 = vsel %vm3019_vm11, 1.0, %v4054_v0 }
0x3f18   :  { %v3022_v26 = vsel %vm34_vm1, %v3350_v49, -inf }
0x3f19   :  { %v3023_v50 = vrot.slane %v3022_v26, 4 }
0x3f1b   :  { %v3024_v53 = vmax.f32 %v3022_v26, %v3023_v50 }
0x3f1d   :  { %v3025_v54 = vrot.slane %v3024_v53, 2 }
0x3f1f   :  { %v3026_v55 = vmax.f32 %v3024_v53, %v3025_v54 }
0x3f21   :  { %v3027_v56 = vrot.slane %v3026_v55, 1 }
0x3f23   :  { %v3028_v58 = vmax.f32 %v3026_v55, %v3027_v56 }
0x3f25   :  { %3876 = vmatmul.mubr.msk.f32.vlgmr.msra.gmra.mxu1 %vm34_vm1, %v3028_v58 }
0x3f26   :  { %3890 = vmatpush3.msra.mxu1 %v4714_v13  ;;  %3897 = vmatprep.mubr.msk.f32.mxu1 %vm4055_vm0, %v4054_v0 }
0x3f27   :  { %3891 = vmatprep.subr.mxu1 %v4054_v0 }
0x3f28   :  { %3892 = vmatpush3.msra.mxu1 %v4723_v14 }
0x3f29   :  { %3893 = vmatprep.subr.mxu1 %v4054_v0 }
0x3f2a   :  { %3894 = vmatpush3.msra.mxu1 %v4730_v15 }
0x3f2b   :  { %3895 = vmatprep.subr.mxu1 %v4054_v0 }
0x3f2c   :  { %3896 = vmatpush3.msra.mxu1 %v4737_v16 }
0x3fe5   :  { %v3098_v57 = vpop.f32.mrf.mxu1 }
0x3fe6   :  { %v3099_v59 = vadd.f32 %v4811_v17, %v3098_v57 }
0x3fe7   :  { %v3877_v60 = vpop.f32.mrf.mxu1 }
0x3fe8   :  { %v3105_v13 = vrot.slane %v3099_v59, %v4428_v31 }
0x3fea   :  { %v3176_v61 = vadd.f32 %v3172_v38, %v3105_v13 }
0x3fec   :  { %4032 = vtanh.f32 %v3176_v61  ;;  %v3353_v14 = vmul.f32 -1.442695, %v3176_v61 }
0x3fee   :  { %4034 = vpow2.f32 %v3353_v14 }
0x3ff9   :  { %v4033_v62 = vpop.eup %4032 }
0x3ffa   :  { %3186 = vrot.lane.b32.xlu1 %v4033_v62, %s4056_s14 }
0x3ffb   :  { %v4035_v63 = vpop.eup %4034 }
0x3ffc   :  { %v3180_v5 = vadd.f32 1.0, %v4035_v63 }
0x3ffe   :  { %4036 = vrcp.f32 %v3180_v5 }
0x400b   :  { %v4037_v15 = vpop.eup %4036 }
0x400c   :  { %v3184_v16 = vmul.f32 %v4037_v15, %v4818_v34 }
0x406c   :  { %v3187_v0 = vpop.permute.xlu1 %3186 }
0x406d   :  { %v3189_v6 = vmul.f32 %v4037_v15, %v3187_v0 }
0x406f   :  { %3191 = vrot.lane.b32.xlu0 %v3189_v6, %s4056_s14 }
0x40e1   :  { %v3192_v7 = vpop.permute.xlu0 %3191 }
0x40e2   :  { %v3194_v12 = vadd.f32 %v3192_v7, %v3184_v16 }
0x40e4   :  { %4038 = vtanh.f32 %v3194_v12 }
0x40f1   :  { %v4039_v31 = vpop.eup %4038 }
0x40f2   :  { %3197 = vrot.lane.b32.xlu1 %v4039_v31, %s4056_s14 }
0x4164   :  { %v3198_v17 = vpop.permute.xlu1 %3197 }
0x4165   :  { %v3200_v18 = vmul.f32 %v4037_v15, %v3198_v17 }
0x4167   :  { %3202 = vrot.lane.b32.xlu1 %v3200_v18, %s4057_s15 }
0x41d9   :  { %v3203_v19 = vpop.permute.xlu1 %3202 }
0x41da   :  { %3898 = vmatmul.mubr.msk.f32.vlgmr.msra.gmra.mxu1 %vm34_vm1, %v3203_v19 }
0x429a   :  { %v3272_v20 = vpop.f32.mrf.mxu1 }
0x429b   :  { %v3273_v21 = vadd.f32 %v4784_v3, %v3272_v20 }
0x429c   :  { %v3899_v22 = vpop.f32.mrf.mxu1 }
0x429d   :  { %3355 = vst.msk [vmem:[%s4874_s8 + $0x40] sm:$0xff] %vm34_vm1, %v3273_v21 }

</bundles_post_ra>
